<compile_context>
chip_gen: v7x
topology: tpu7x:2x2x1
jax: 0.10.0
libtpu: 0.0.40
codegen_flags: <defaults>
</compile_context>

<pallas_src>
import functools

import jax
import jax.numpy as jnp
from jax.experimental import pallas as pl
from jax.experimental.pallas import tpu as pltpu


# ----------------------------------------------------------------------------
# Fused Pallas kernel (per image): conv1 -> conv2 -> 1x1 decoder -> upsample
# ----------------------------------------------------------------------------

def _fused_forward_kernel(xph_ref, w1_ref, b1_ref, w2_ref, b2_ref,
                          wdt_ref, bd_ref, mt_ref, o_ref, f1ph_ref,
                          *, gh, gw):
    """Per-image fused encoder -> decoder -> bilinear upsample.

    xph_ref : (16, gh+1, gw+1, Cin) bf16  4x4 phase split of the input padded
              to (4*gh+4, 4*gw+4); phase index = (row % 4) * 4 + (col % 4).
    w1_ref  : (9*Cin, C1)  bf16  packed conv1 taps (tap-major rows)
    b1_ref  : (1, C1)      f32   BN-folded bias
    w2_ref  : (9*C1, C2)   bf16  packed conv2 taps
    b2_ref  : (1, C2)      f32
    wdt_ref : (ncls, C2)   bf16  1x1 decoder weight, transposed
    bd_ref  : (ncls, 1)    f32
    mt_ref  : (gh*gw, H*W) bf16  kron(A, B)^T bilinear matrix
    o_ref   : (1, ncls, H*W) f32 (lane-dense output block)
    f1ph_ref: (4, gh+1, gw+1, C1) bf16 scratch -- 2x2 phase split of the
              zero-padded conv1 output, i.e. exactly conv2's input layout.
    """
    cin = xph_ref.shape[-1]
    c1 = w1_ref.shape[-1]
    m1 = gh * gw  # spatial positions per parity group == conv2 output size

    # ---- conv1: 3x3 stride-2 pad-1 + folded BN + ReLU, one packed matmul ---
    # Patch-matrix rows are grouped by output parity (po, qo) so each group
    # lands contiguously in one 2x2 phase of the (padded) conv1 output.
    slab = {}
    groups = []
    for po in range(2):
        for qo in range(2):
            taps = []
            for di in range(3):
                for dj in range(3):
                    r, c = 2 * po + di, 2 * qo + dj
                    if (r, c) not in slab:
                        ph = (r % 4) * 4 + (c % 4)
                        slab[(r, c)] = xph_ref[
                            ph, r // 4:r // 4 + gh, c // 4:c // 4 + gw, :
                        ].reshape(m1, cin)
                    taps.append(slab[(r, c)])
            groups.append(jnp.concatenate(taps, axis=1))          # (m1, 9*Cin)
    patches1 = jnp.concatenate(groups, axis=0)                    # (4*m1, 9*Cin)
    acc1 = jnp.dot(patches1, w1_ref[...], preferred_element_type=jnp.float32)
    f1 = jnp.maximum(acc1 + b1_ref[...], 0.0).astype(jnp.bfloat16)

    # ---- scatter conv1 output into the zero-padded 2x2 phase split ---------
    f1ph_ref[...] = jnp.zeros_like(f1ph_ref)
    for po in range(2):
        for qo in range(2):
            g = po * 2 + qo
            blk = f1[g * m1:(g + 1) * m1, :].reshape(gh, gw, c1)
            f1ph_ref[(1 - po) * 2 + (1 - qo), po:po + gh, qo:qo + gw, :] = blk

    # ---- conv2: 3x3 stride-2 pad-1 + folded BN + ReLU, one packed matmul ---
    taps2 = []
    for di in range(3):
        for dj in range(3):
            p = (di % 2) * 2 + (dj % 2)
            taps2.append(
                f1ph_ref[p, di // 2:di // 2 + gh, dj // 2:dj // 2 + gw, :]
                .reshape(m1, c1))
    patches2 = jnp.concatenate(taps2, axis=1)                     # (m1, 9*C1)
    acc2 = jnp.dot(patches2, w2_ref[...], preferred_element_type=jnp.float32)
    feat = jnp.maximum(acc2 + b2_ref[...], 0.0).astype(jnp.bfloat16)  # (m1, C2)

    # ---- fused 1x1 decoder: logits^T = Wd^T @ feat^T  -> (ncls, m1) --------
    logits_t = jax.lax.dot_general(
        wdt_ref[...], feat, (((1,), (1,)), ((), ())),
        preferred_element_type=jnp.float32) + bd_ref[...]

    # ---- bilinear upsample (align_corners=True) as one matmul --------------
    out = jnp.dot(logits_t.astype(jnp.bfloat16), mt_ref[...],
                  preferred_element_type=jnp.float32)             # (ncls, H*W)
    o_ref[0] = out.astype(o_ref.dtype)


def fused_forward(xph, w1p, b1, w2p, b2, wdt, bd, mt, *, n, gh, gw, ncls, hw):
    cin = xph.shape[-1]
    c1 = w1p.shape[-1]
    c2 = w2p.shape[-1]
    kernel = functools.partial(_fused_forward_kernel, gh=gh, gw=gw)
    return pl.pallas_call(
        kernel,
        out_shape=jax.ShapeDtypeStruct((n, ncls, hw), jnp.float32),
        grid=(n,),
        in_specs=[
            pl.BlockSpec((16, gh + 1, gw + 1, cin), lambda i: (i, 0, 0, 0)),
            pl.BlockSpec((9 * cin, c1), lambda i: (0, 0)),   # VMEM-resident
            pl.BlockSpec((1, c1), lambda i: (0, 0)),
            pl.BlockSpec((9 * c1, c2), lambda i: (0, 0)),
            pl.BlockSpec((1, c2), lambda i: (0, 0)),
            pl.BlockSpec((ncls, c2), lambda i: (0, 0)),
            pl.BlockSpec((ncls, 1), lambda i: (0, 0)),
            pl.BlockSpec((gh * gw, hw), lambda i: (0, 0)),
        ],
        out_specs=pl.BlockSpec((1, ncls, hw), lambda i: (i, 0, 0)),
        scratch_shapes=[pltpu.VMEM((4, gh + 1, gw + 1, c1), jnp.bfloat16)],
        compiler_params=pltpu.CompilerParams(dimension_semantics=("parallel",)),
    )(xph, w1p, b1, w2p, b2, wdt, bd, mt)


# ----------------------------------------------------------------------------
# Plain-JAX glue: input phase split, interp matrices, BN folding, parameters
# ----------------------------------------------------------------------------

def interp_matrix(out_size, in_size):
    """Bilinear (align_corners=True) 1-D interpolation matrix (out, in)."""
    if out_size == 1:
        src = jnp.zeros((1,), jnp.float32)
    else:
        src = jnp.arange(out_size, dtype=jnp.float32) * (in_size - 1) / (out_size - 1)
    i0 = jnp.clip(jnp.floor(src).astype(jnp.int32), 0, in_size - 1)
    i1 = jnp.clip(i0 + 1, 0, in_size - 1)
    frac = src - i0.astype(jnp.float32)
    A = (jax.nn.one_hot(i0, in_size, dtype=jnp.float32) * (1.0 - frac)[:, None]
         + jax.nn.one_hot(i1, in_size, dtype=jnp.float32) * frac[:, None])
    return A


def fold_bn(w, b, gamma, beta, mean, var, eps=1e-5):
    """Fold eval-mode BatchNorm into conv weight/bias. w: (Cout, Cin, kh, kw)."""
    scale = gamma / jnp.sqrt(var + eps)
    w_f = w * scale[:, None, None, None]
    b_f = (b - mean) * scale + beta
    return w_f, b_f


class PallasModelBuilder:
    """Synthetic stand-in for ModelBuilder (encoder -> decoder -> bilinear up)."""

    def __init__(self, in_ch=4, num_classes=5, in_hw=(16, 16),
                 key=jax.random.PRNGKey(0), mxu_dtype=jnp.bfloat16):
        self.in_ch = in_ch
        self.num_classes = num_classes
        self.in_hw = in_hw
        self.mxu_dtype = mxu_dtype
        h, w = in_hw
        assert h % 4 == 0 and w % 4 == 0, "fused kernel requires H, W % 4 == 0"
        k1, k2, k3 = jax.random.split(key, 3)
        c1, c2 = 16, 32
        self.c1, self.c2 = c1, c2

        def make_conv(k, cin, cout):
            wt = jax.random.normal(k, (cout, cin, 3, 3), jnp.float32) * 0.1
            b = jnp.zeros((cout,), jnp.float32)
            g = 1.0 + 0.01 * jnp.arange(cout, dtype=jnp.float32)
            be = 0.01 * jnp.arange(cout, dtype=jnp.float32)
            w_f, b_f = fold_bn(wt, b, g, be, jnp.zeros((cout,)), jnp.ones((cout,)))
            w_hwio = jnp.transpose(w_f, (2, 3, 1, 0))               # (3,3,cin,cout)
            w_packed = w_hwio.reshape(9 * cin, cout).astype(mxu_dtype)
            return w_packed, w_hwio, b_f

        self.w1p, self.w1_hwio, self.b1 = make_conv(k1, in_ch, c1)
        self.w2p, self.w2_hwio, self.b2 = make_conv(k2, c1, c2)
        self.b1_2d = self.b1.reshape(1, c1)
        self.b2_2d = self.b2.reshape(1, c2)

        # decoder: 1x1 conv, c2 -> num_classes
        wd = jax.random.normal(k3, (num_classes, c2, 1, 1), jnp.float32) * 0.1
        self.wd_dec = wd.reshape(num_classes, c2).T                 # (c2, ncls) f32
        self.wdt = wd.reshape(num_classes, c2).astype(mxu_dtype)    # (ncls, c2)
        self.bd = 0.01 * jnp.arange(num_classes, dtype=jnp.float32)
        self.bd_2d = self.bd.reshape(num_classes, 1)

        # bilinear (align_corners=True) upsample matrices, precomputed once
        h2, w2 = h // 4, w // 4
        self.A = interp_matrix(h, h2)                               # (H, h2) f32
        self.B = interp_matrix(w, w2)                               # (W, w2) f32
        self.mt = jnp.kron(self.A, self.B).T.astype(mxu_dtype)      # (h2*w2, H*W)

        self._jit_forward = jax.jit(self._forward)

    # ---- input preprocessing (replaces the NCHW->NHWC transform) -----------
    def _phase_split_input(self, x_nchw):
        """NCHW -> bf16 NHWC, pad to a multiple of 4, 4x4 stride-phase split.

        (n, c, h, w) -> (n*16, h/4+1, w/4+1, c); phase = (row%4)*4 + (col%4).
        """
        n, c, h, w = x_nchw.shape
        x = jnp.transpose(x_nchw, (0, 2, 3, 1)).astype(self.mxu_dtype)
        xp = jnp.pad(x, ((0, 0), (1, 3), (1, 3), (0, 0)))       # (n, h+4, w+4, c)
        gh1, gw1 = (h + 4) // 4, (w + 4) // 4
        xr = xp.reshape(n, gh1, 4, gw1, 4, c).transpose(0, 2, 4, 1, 3, 5)
        return xr.reshape(n * 16, gh1, gw1, c)

    # ---- Pallas forward -----------------------------------------------------
    def _forward(self, x):
        # x: NCHW float32 (matches PyTorch forward signature)
        n, c, h, w = x.shape
        assert (h, w) == self.in_hw and c == self.in_ch
        gh, gw = h // 4, w // 4
        xph = self._phase_split_input(x)
        out = fused_forward(xph, self.w1p, self.b1_2d, self.w2p, self.b2_2d,
                            self.wdt, self.bd_2d, self.mt,
                            n=n, gh=gh, gw=gw, ncls=self.num_classes, hw=h * w)
        return out.reshape(n, self.num_classes, h, w)

    def __call__(self, x, infer=False):
        # `infer` unused in this (no-aux) config branch.
        return self._jit_forward(x)

    # ---- pure-JAX reference (f32) for correctness checking ------------------
    def reference_forward(self, x):
        n, c, h, w = x.shape

        def conv(xin, w_hwio, b):
            y = jax.lax.conv_general_dilated(
                xin, w_hwio, window_strides=(2, 2), padding=((1, 1), (1, 1)),
                dimension_numbers=('NHWC', 'HWIO', 'NHWC'))
            return jnp.maximum(y + b[None, None, None, :], 0.0)

        xt = jnp.transpose(x, (0, 2, 3, 1)).astype(jnp.float32)
        y1 = conv(xt, self.w1_hwio, self.b1)
        y2 = conv(y1, self.w2_hwio, self.b2)
        logits = jnp.einsum('nhwc,ck->nhwk', y2, self.wd_dec) + self.bd
        planes = jnp.transpose(logits, (0, 3, 1, 2))             # (n, ncls, h2, w2)
        t = jnp.einsum('Hh,nkhw->nkHw', self.A, planes)
        return jnp.einsum('nkHw,wW->nkHW', t, self.B.T)


# TODO(synk): aux_loss / bce_loss / fpn / unet / contrast branches of
# ModelBuilder.forward are config-gated module compositions not exercised here.


if __name__ == "__main__":
    key = jax.random.PRNGKey(0)
    x = jax.random.normal(key, (2, 4, 16, 16), jnp.float32)       # NCHW

    model = PallasModelBuilder(in_ch=4, num_classes=5, in_hw=(16, 16),
                               key=jax.random.PRNGKey(0))
    out = jax.block_until_ready(model(x))
    assert out.shape == (2, 5, 16, 16), out.shape
    assert bool(jnp.all(jnp.isfinite(out)))

    # Numerical check against a pure-JAX f32 reference (bf16 MXU operands in
    # the kernel -> loose tolerance).
    ref = jax.block_until_ready(model.reference_forward(x))
    max_err = float(jnp.max(jnp.abs(out - ref)))
    assert max_err < 5e-2, f"max abs error {max_err}"

    print("KERNEL_OK")
</pallas_src>

<mosaic_0001>
module attributes {stable_mosaic.version = 11 : i64} {
  func.func @_fused_forward_kernel(%arg0: i32, %arg1: memref<16x5x5x4xbf16, #tpu.memory_space<vmem>>, %arg2: memref<36x16xbf16, #tpu.memory_space<vmem>>, %arg3: memref<1x16xf32, #tpu.memory_space<vmem>>, %arg4: memref<144x32xbf16, #tpu.memory_space<vmem>>, %arg5: memref<1x32xf32, #tpu.memory_space<vmem>>, %arg6: memref<5x32xbf16, #tpu.memory_space<vmem>>, %arg7: memref<5x1xf32, #tpu.memory_space<vmem>>, %arg8: memref<16x256xbf16, #tpu.memory_space<vmem>>, %arg9: memref<1x5x256xf32, #tpu.memory_space<vmem>>, %arg10: memref<4x5x5x16xbf16, #tpu.memory_space<vmem>>) attributes {dimension_semantics = [#tpu.dimension_semantics<parallel>], iteration_bounds = array<i64: 2>, scalar_prefetch = 0 : i64, scratch_operands = 1 : i64, tpu.core_type = #tpu.core_type<tc>, window_params = [{transform_indices = @transform_0, window_bounds = array<i64: 16, 5, 5, 4>}, {pipeline_mode = #tpu.pipeline_mode<synchronous>, transform_indices = @transform_1, window_bounds = array<i64: 36, 16>}, {pipeline_mode = #tpu.pipeline_mode<synchronous>, transform_indices = @transform_2, window_bounds = array<i64: 1, 16>}, {pipeline_mode = #tpu.pipeline_mode<synchronous>, transform_indices = @transform_3, window_bounds = array<i64: 144, 32>}, {pipeline_mode = #tpu.pipeline_mode<synchronous>, transform_indices = @transform_4, window_bounds = array<i64: 1, 32>}, {pipeline_mode = #tpu.pipeline_mode<synchronous>, transform_indices = @transform_5, window_bounds = array<i64: 5, 32>}, {pipeline_mode = #tpu.pipeline_mode<synchronous>, transform_indices = @transform_6, window_bounds = array<i64: 5, 1>}, {pipeline_mode = #tpu.pipeline_mode<synchronous>, transform_indices = @transform_7, window_bounds = array<i64: 16, 256>}, {transform_indices = @transform_8, window_bounds = array<i64: 1, 5, 256>}]} {
    %c0 = arith.constant 0 : index
    %c0_0 = arith.constant 0 : index
    %c0_1 = arith.constant 0 : index
    %c0_2 = arith.constant 0 : index
    %0 = vector.load %arg1[%c0, %c0_0, %c0_1, %c0_2] : memref<16x5x5x4xbf16, #tpu.memory_space<vmem>>, vector<1x4x4x4xbf16>
    %1 = vector.shape_cast %0 : vector<1x4x4x4xbf16> to vector<4x4x4xbf16>
    %2 = vector.shape_cast %1 : vector<4x4x4xbf16> to vector<16x4xbf16>
    %c1 = arith.constant 1 : index
    %c0_3 = arith.constant 0 : index
    %c0_4 = arith.constant 0 : index
    %c0_5 = arith.constant 0 : index
    %3 = vector.load %arg1[%c1, %c0_3, %c0_4, %c0_5] : memref<16x5x5x4xbf16, #tpu.memory_space<vmem>>, vector<1x4x4x4xbf16>
    %4 = vector.shape_cast %3 : vector<1x4x4x4xbf16> to vector<4x4x4xbf16>
    %5 = vector.shape_cast %4 : vector<4x4x4xbf16> to vector<16x4xbf16>
    %c2 = arith.constant 2 : index
    %c0_6 = arith.constant 0 : index
    %c0_7 = arith.constant 0 : index
    %c0_8 = arith.constant 0 : index
    %6 = vector.load %arg1[%c2, %c0_6, %c0_7, %c0_8] : memref<16x5x5x4xbf16, #tpu.memory_space<vmem>>, vector<1x4x4x4xbf16>
    %7 = vector.shape_cast %6 : vector<1x4x4x4xbf16> to vector<4x4x4xbf16>
    %8 = vector.shape_cast %7 : vector<4x4x4xbf16> to vector<16x4xbf16>
    %c4 = arith.constant 4 : index
    %c0_9 = arith.constant 0 : index
    %c0_10 = arith.constant 0 : index
    %c0_11 = arith.constant 0 : index
    %9 = vector.load %arg1[%c4, %c0_9, %c0_10, %c0_11] : memref<16x5x5x4xbf16, #tpu.memory_space<vmem>>, vector<1x4x4x4xbf16>
    %10 = vector.shape_cast %9 : vector<1x4x4x4xbf16> to vector<4x4x4xbf16>
    %11 = vector.shape_cast %10 : vector<4x4x4xbf16> to vector<16x4xbf16>
    %c5 = arith.constant 5 : index
    %c0_12 = arith.constant 0 : index
    %c0_13 = arith.constant 0 : index
    %c0_14 = arith.constant 0 : index
    %12 = vector.load %arg1[%c5, %c0_12, %c0_13, %c0_14] : memref<16x5x5x4xbf16, #tpu.memory_space<vmem>>, vector<1x4x4x4xbf16>
    %13 = vector.shape_cast %12 : vector<1x4x4x4xbf16> to vector<4x4x4xbf16>
    %14 = vector.shape_cast %13 : vector<4x4x4xbf16> to vector<16x4xbf16>
    %c6 = arith.constant 6 : index
    %c0_15 = arith.constant 0 : index
    %c0_16 = arith.constant 0 : index
    %c0_17 = arith.constant 0 : index
    %15 = vector.load %arg1[%c6, %c0_15, %c0_16, %c0_17] : memref<16x5x5x4xbf16, #tpu.memory_space<vmem>>, vector<1x4x4x4xbf16>
    %16 = vector.shape_cast %15 : vector<1x4x4x4xbf16> to vector<4x4x4xbf16>
    %17 = vector.shape_cast %16 : vector<4x4x4xbf16> to vector<16x4xbf16>
    %c8 = arith.constant 8 : index
    %c0_18 = arith.constant 0 : index
    %c0_19 = arith.constant 0 : index
    %c0_20 = arith.constant 0 : index
    %18 = vector.load %arg1[%c8, %c0_18, %c0_19, %c0_20] : memref<16x5x5x4xbf16, #tpu.memory_space<vmem>>, vector<1x4x4x4xbf16>
    %19 = vector.shape_cast %18 : vector<1x4x4x4xbf16> to vector<4x4x4xbf16>
    %20 = vector.shape_cast %19 : vector<4x4x4xbf16> to vector<16x4xbf16>
    %c9 = arith.constant 9 : index
    %c0_21 = arith.constant 0 : index
    %c0_22 = arith.constant 0 : index
    %c0_23 = arith.constant 0 : index
    %21 = vector.load %arg1[%c9, %c0_21, %c0_22, %c0_23] : memref<16x5x5x4xbf16, #tpu.memory_space<vmem>>, vector<1x4x4x4xbf16>
    %22 = vector.shape_cast %21 : vector<1x4x4x4xbf16> to vector<4x4x4xbf16>
    %23 = vector.shape_cast %22 : vector<4x4x4xbf16> to vector<16x4xbf16>
    %c10 = arith.constant 10 : index
    %c0_24 = arith.constant 0 : index
    %c0_25 = arith.constant 0 : index
    %c0_26 = arith.constant 0 : index
    %24 = vector.load %arg1[%c10, %c0_24, %c0_25, %c0_26] : memref<16x5x5x4xbf16, #tpu.memory_space<vmem>>, vector<1x4x4x4xbf16>
    %25 = vector.shape_cast %24 : vector<1x4x4x4xbf16> to vector<4x4x4xbf16>
    %26 = vector.shape_cast %25 : vector<4x4x4xbf16> to vector<16x4xbf16>
    %27 = tpu.concatenate %2, %5, %8, %11, %14, %17, %20, %23, %26 in 1 : vector<16x4xbf16>, vector<16x4xbf16>, vector<16x4xbf16>, vector<16x4xbf16>, vector<16x4xbf16>, vector<16x4xbf16>, vector<16x4xbf16>, vector<16x4xbf16>, vector<16x4xbf16> -> vector<16x36xbf16>
    %c3 = arith.constant 3 : index
    %c0_27 = arith.constant 0 : index
    %c0_28 = arith.constant 0 : index
    %c0_29 = arith.constant 0 : index
    %28 = vector.load %arg1[%c3, %c0_27, %c0_28, %c0_29] : memref<16x5x5x4xbf16, #tpu.memory_space<vmem>>, vector<1x4x4x4xbf16>
    %29 = vector.shape_cast %28 : vector<1x4x4x4xbf16> to vector<4x4x4xbf16>
    %30 = vector.shape_cast %29 : vector<4x4x4xbf16> to vector<16x4xbf16>
    %c0_30 = arith.constant 0 : index
    %c0_31 = arith.constant 0 : index
    %c1_32 = arith.constant 1 : index
    %c0_33 = arith.constant 0 : index
    %31 = vector.load %arg1[%c0_30, %c0_31, %c1_32, %c0_33] : memref<16x5x5x4xbf16, #tpu.memory_space<vmem>>, vector<1x4x4x4xbf16>
    %32 = vector.shape_cast %31 : vector<1x4x4x4xbf16> to vector<4x4x4xbf16>
    %33 = vector.shape_cast %32 : vector<4x4x4xbf16> to vector<16x4xbf16>
    %c7 = arith.constant 7 : index
    %c0_34 = arith.constant 0 : index
    %c0_35 = arith.constant 0 : index
    %c0_36 = arith.constant 0 : index
    %34 = vector.load %arg1[%c7, %c0_34, %c0_35, %c0_36] : memref<16x5x5x4xbf16, #tpu.memory_space<vmem>>, vector<1x4x4x4xbf16>
    %35 = vector.shape_cast %34 : vector<1x4x4x4xbf16> to vector<4x4x4xbf16>
    %36 = vector.shape_cast %35 : vector<4x4x4xbf16> to vector<16x4xbf16>
    %c4_37 = arith.constant 4 : index
    %c0_38 = arith.constant 0 : index
    %c1_39 = arith.constant 1 : index
    %c0_40 = arith.constant 0 : index
    %37 = vector.load %arg1[%c4_37, %c0_38, %c1_39, %c0_40] : memref<16x5x5x4xbf16, #tpu.memory_space<vmem>>, vector<1x4x4x4xbf16>
    %38 = vector.shape_cast %37 : vector<1x4x4x4xbf16> to vector<4x4x4xbf16>
    %39 = vector.shape_cast %38 : vector<4x4x4xbf16> to vector<16x4xbf16>
    %c11 = arith.constant 11 : index
    %c0_41 = arith.constant 0 : index
    %c0_42 = arith.constant 0 : index
    %c0_43 = arith.constant 0 : index
    %40 = vector.load %arg1[%c11, %c0_41, %c0_42, %c0_43] : memref<16x5x5x4xbf16, #tpu.memory_space<vmem>>, vector<1x4x4x4xbf16>
    %41 = vector.shape_cast %40 : vector<1x4x4x4xbf16> to vector<4x4x4xbf16>
    %42 = vector.shape_cast %41 : vector<4x4x4xbf16> to vector<16x4xbf16>
    %c8_44 = arith.constant 8 : index
    %c0_45 = arith.constant 0 : index
    %c1_46 = arith.constant 1 : index
    %c0_47 = arith.constant 0 : index
    %43 = vector.load %arg1[%c8_44, %c0_45, %c1_46, %c0_47] : memref<16x5x5x4xbf16, #tpu.memory_space<vmem>>, vector<1x4x4x4xbf16>
    %44 = vector.shape_cast %43 : vector<1x4x4x4xbf16> to vector<4x4x4xbf16>
    %45 = vector.shape_cast %44 : vector<4x4x4xbf16> to vector<16x4xbf16>
    %46 = tpu.concatenate %8, %30, %33, %17, %36, %39, %26, %42, %45 in 1 : vector<16x4xbf16>, vector<16x4xbf16>, vector<16x4xbf16>, vector<16x4xbf16>, vector<16x4xbf16>, vector<16x4xbf16>, vector<16x4xbf16>, vector<16x4xbf16>, vector<16x4xbf16> -> vector<16x36xbf16>
    %c12 = arith.constant 12 : index
    %c0_48 = arith.constant 0 : index
    %c0_49 = arith.constant 0 : index
    %c0_50 = arith.constant 0 : index
    %47 = vector.load %arg1[%c12, %c0_48, %c0_49, %c0_50] : memref<16x5x5x4xbf16, #tpu.memory_space<vmem>>, vector<1x4x4x4xbf16>
    %48 = vector.shape_cast %47 : vector<1x4x4x4xbf16> to vector<4x4x4xbf16>
    %49 = vector.shape_cast %48 : vector<4x4x4xbf16> to vector<16x4xbf16>
    %c13 = arith.constant 13 : index
    %c0_51 = arith.constant 0 : index
    %c0_52 = arith.constant 0 : index
    %c0_53 = arith.constant 0 : index
    %50 = vector.load %arg1[%c13, %c0_51, %c0_52, %c0_53] : memref<16x5x5x4xbf16, #tpu.memory_space<vmem>>, vector<1x4x4x4xbf16>
    %51 = vector.shape_cast %50 : vector<1x4x4x4xbf16> to vector<4x4x4xbf16>
    %52 = vector.shape_cast %51 : vector<4x4x4xbf16> to vector<16x4xbf16>
    %c14 = arith.constant 14 : index
    %c0_54 = arith.constant 0 : index
    %c0_55 = arith.constant 0 : index
    %c0_56 = arith.constant 0 : index
    %53 = vector.load %arg1[%c14, %c0_54, %c0_55, %c0_56] : memref<16x5x5x4xbf16, #tpu.memory_space<vmem>>, vector<1x4x4x4xbf16>
    %54 = vector.shape_cast %53 : vector<1x4x4x4xbf16> to vector<4x4x4xbf16>
    %55 = vector.shape_cast %54 : vector<4x4x4xbf16> to vector<16x4xbf16>
    %c0_57 = arith.constant 0 : index
    %c1_58 = arith.constant 1 : index
    %c0_59 = arith.constant 0 : index
    %c0_60 = arith.constant 0 : index
    %56 = vector.load %arg1[%c0_57, %c1_58, %c0_59, %c0_60] : memref<16x5x5x4xbf16, #tpu.memory_space<vmem>>, vector<1x4x4x4xbf16>
    %57 = vector.shape_cast %56 : vector<1x4x4x4xbf16> to vector<4x4x4xbf16>
    %58 = vector.shape_cast %57 : vector<4x4x4xbf16> to vector<16x4xbf16>
    %c1_61 = arith.constant 1 : index
    %c1_62 = arith.constant 1 : index
    %c0_63 = arith.constant 0 : index
    %c0_64 = arith.constant 0 : index
    %59 = vector.load %arg1[%c1_61, %c1_62, %c0_63, %c0_64] : memref<16x5x5x4xbf16, #tpu.memory_space<vmem>>, vector<1x4x4x4xbf16>
    %60 = vector.shape_cast %59 : vector<1x4x4x4xbf16> to vector<4x4x4xbf16>
    %61 = vector.shape_cast %60 : vector<4x4x4xbf16> to vector<16x4xbf16>
    %c2_65 = arith.constant 2 : index
    %c1_66 = arith.constant 1 : index
    %c0_67 = arith.constant 0 : index
    %c0_68 = arith.constant 0 : index
    %62 = vector.load %arg1[%c2_65, %c1_66, %c0_67, %c0_68] : memref<16x5x5x4xbf16, #tpu.memory_space<vmem>>, vector<1x4x4x4xbf16>
    %63 = vector.shape_cast %62 : vector<1x4x4x4xbf16> to vector<4x4x4xbf16>
    %64 = vector.shape_cast %63 : vector<4x4x4xbf16> to vector<16x4xbf16>
    %65 = tpu.concatenate %20, %23, %26, %49, %52, %55, %58, %61, %64 in 1 : vector<16x4xbf16>, vector<16x4xbf16>, vector<16x4xbf16>, vector<16x4xbf16>, vector<16x4xbf16>, vector<16x4xbf16>, vector<16x4xbf16>, vector<16x4xbf16>, vector<16x4xbf16> -> vector<16x36xbf16>
    %c15 = arith.constant 15 : index
    %c0_69 = arith.constant 0 : index
    %c0_70 = arith.constant 0 : index
    %c0_71 = arith.constant 0 : index
    %66 = vector.load %arg1[%c15, %c0_69, %c0_70, %c0_71] : memref<16x5x5x4xbf16, #tpu.memory_space<vmem>>, vector<1x4x4x4xbf16>
    %67 = vector.shape_cast %66 : vector<1x4x4x4xbf16> to vector<4x4x4xbf16>
    %68 = vector.shape_cast %67 : vector<4x4x4xbf16> to vector<16x4xbf16>
    %c12_72 = arith.constant 12 : index
    %c0_73 = arith.constant 0 : index
    %c1_74 = arith.constant 1 : index
    %c0_75 = arith.constant 0 : index
    %69 = vector.load %arg1[%c12_72, %c0_73, %c1_74, %c0_75] : memref<16x5x5x4xbf16, #tpu.memory_space<vmem>>, vector<1x4x4x4xbf16>
    %70 = vector.shape_cast %69 : vector<1x4x4x4xbf16> to vector<4x4x4xbf16>
    %71 = vector.shape_cast %70 : vector<4x4x4xbf16> to vector<16x4xbf16>
    %c3_76 = arith.constant 3 : index
    %c1_77 = arith.constant 1 : index
    %c0_78 = arith.constant 0 : index
    %c0_79 = arith.constant 0 : index
    %72 = vector.load %arg1[%c3_76, %c1_77, %c0_78, %c0_79] : memref<16x5x5x4xbf16, #tpu.memory_space<vmem>>, vector<1x4x4x4xbf16>
    %73 = vector.shape_cast %72 : vector<1x4x4x4xbf16> to vector<4x4x4xbf16>
    %74 = vector.shape_cast %73 : vector<4x4x4xbf16> to vector<16x4xbf16>
    %c0_80 = arith.constant 0 : index
    %c1_81 = arith.constant 1 : index
    %c1_82 = arith.constant 1 : index
    %c0_83 = arith.constant 0 : index
    %75 = vector.load %arg1[%c0_80, %c1_81, %c1_82, %c0_83] : memref<16x5x5x4xbf16, #tpu.memory_space<vmem>>, vector<1x4x4x4xbf16>
    %76 = vector.shape_cast %75 : vector<1x4x4x4xbf16> to vector<4x4x4xbf16>
    %77 = vector.shape_cast %76 : vector<4x4x4xbf16> to vector<16x4xbf16>
    %78 = tpu.concatenate %26, %42, %45, %55, %68, %71, %64, %74, %77 in 1 : vector<16x4xbf16>, vector<16x4xbf16>, vector<16x4xbf16>, vector<16x4xbf16>, vector<16x4xbf16>, vector<16x4xbf16>, vector<16x4xbf16>, vector<16x4xbf16>, vector<16x4xbf16> -> vector<16x36xbf16>
    %79 = tpu.concatenate %27, %46, %65, %78 in 0 : vector<16x36xbf16>, vector<16x36xbf16>, vector<16x36xbf16>, vector<16x36xbf16> -> vector<64x36xbf16>
    %c0_84 = arith.constant 0 : index
    %c0_85 = arith.constant 0 : index
    %80 = vector.load %arg2[%c0_84, %c0_85] : memref<36x16xbf16, #tpu.memory_space<vmem>>, vector<36x16xbf16>
    %cst = arith.constant dense<0.000000e+00> : vector<64x16xf32>
    %81 = tpu.matmul %79, %80, %cst {dimension_numbers = #tpu.dot_dimension_numbers<[1], [0], [0], [1], [0, 0, 1, 1], [], []>} : vector<64x36xbf16>, vector<36x16xbf16>, vector<64x16xf32> -> vector<64x16xf32>
    %c0_86 = arith.constant 0 : index
    %c0_87 = arith.constant 0 : index
    %82 = vector.load %arg3[%c0_86, %c0_87] : memref<1x16xf32, #tpu.memory_space<vmem>>, vector<1x16xf32>
    %83 = vector.broadcast %82 : vector<1x16xf32> to vector<64x16xf32>
    %84 = arith.addf %81, %83 : vector<64x16xf32>
    %cst_88 = arith.constant 0.000000e+00 : f32
    %85 = vector.broadcast %cst_88 : f32 to vector<64x16xf32>
    %86 = arith.maximumf %84, %85 : vector<64x16xf32>
    %87 = arith.truncf %86 : vector<64x16xf32> to vector<64x16xbf16>
    %cst_89 = arith.constant 0.000000e+00 : bf16
    %88 = vector.broadcast %cst_89 : bf16 to vector<4x5x5x16xbf16>
    %c0_90 = arith.constant 0 : index
    %c0_91 = arith.constant 0 : index
    %c0_92 = arith.constant 0 : index
    %c0_93 = arith.constant 0 : index
    %89 = vector.load %arg10[%c0_90, %c0_91, %c0_92, %c0_93] : memref<4x5x5x16xbf16, #tpu.memory_space<vmem>>, vector<4x5x5x16xbf16>
    tpu.vector_store %arg10[%c0_90, %c0_91, %c0_92, %c0_93], %88 {strides = array<i32>} : memref<4x5x5x16xbf16, #tpu.memory_space<vmem>>, vector<4x5x5x16xbf16>,
    %90 = vector.extract_strided_slice %87 {offsets = [0, 0], sizes = [16, 16], strides = [1, 1]} : vector<64x16xbf16> to vector<16x16xbf16>
    %91 = vector.shape_cast %90 : vector<16x16xbf16> to vector<4x4x16xbf16>
    %c3_94 = arith.constant 3 : index
    %c0_95 = arith.constant 0 : index
    %c0_96 = arith.constant 0 : index
    %c0_97 = arith.constant 0 : index
    %92 = vector.load %arg10[%c3_94, %c0_95, %c0_96, %c0_97] : memref<4x5x5x16xbf16, #tpu.memory_space<vmem>>, vector<1x4x4x16xbf16>
    %93 = vector.shape_cast %92 : vector<1x4x4x16xbf16> to vector<4x4x16xbf16>
    %94 = vector.shape_cast %91 : vector<4x4x16xbf16> to vector<1x4x4x16xbf16>
    tpu.vector_store %arg10[%c3_94, %c0_95, %c0_96, %c0_97], %94 {strides = array<i32>} : memref<4x5x5x16xbf16, #tpu.memory_space<vmem>>, vector<1x4x4x16xbf16>,
    %95 = vector.extract_strided_slice %87 {offsets = [16, 0], sizes = [16, 16], strides = [1, 1]} : vector<64x16xbf16> to vector<16x16xbf16>
    %96 = vector.shape_cast %95 : vector<16x16xbf16> to vector<4x4x16xbf16>
    %c2_98 = arith.constant 2 : index
    %c0_99 = arith.constant 0 : index
    %c1_100 = arith.constant 1 : index
    %c0_101 = arith.constant 0 : index
    %97 = vector.load %arg10[%c2_98, %c0_99, %c1_100, %c0_101] : memref<4x5x5x16xbf16, #tpu.memory_space<vmem>>, vector<1x4x4x16xbf16>
    %98 = vector.shape_cast %97 : vector<1x4x4x16xbf16> to vector<4x4x16xbf16>
    %99 = vector.shape_cast %96 : vector<4x4x16xbf16> to vector<1x4x4x16xbf16>
    tpu.vector_store %arg10[%c2_98, %c0_99, %c1_100, %c0_101], %99 {strides = array<i32>} : memref<4x5x5x16xbf16, #tpu.memory_space<vmem>>, vector<1x4x4x16xbf16>,
    %100 = vector.extract_strided_slice %87 {offsets = [32, 0], sizes = [16, 16], strides = [1, 1]} : vector<64x16xbf16> to vector<16x16xbf16>
    %101 = vector.shape_cast %100 : vector<16x16xbf16> to vector<4x4x16xbf16>
    %c1_102 = arith.constant 1 : index
    %c1_103 = arith.constant 1 : index
    %c0_104 = arith.constant 0 : index
    %c0_105 = arith.constant 0 : index
    %102 = vector.load %arg10[%c1_102, %c1_103, %c0_104, %c0_105] : memref<4x5x5x16xbf16, #tpu.memory_space<vmem>>, vector<1x4x4x16xbf16>
    %103 = vector.shape_cast %102 : vector<1x4x4x16xbf16> to vector<4x4x16xbf16>
    %104 = vector.shape_cast %101 : vector<4x4x16xbf16> to vector<1x4x4x16xbf16>
    tpu.vector_store %arg10[%c1_102, %c1_103, %c0_104, %c0_105], %104 {strides = array<i32>} : memref<4x5x5x16xbf16, #tpu.memory_space<vmem>>, vector<1x4x4x16xbf16>,
    %105 = vector.extract_strided_slice %87 {offsets = [48, 0], sizes = [16, 16], strides = [1, 1]} : vector<64x16xbf16> to vector<16x16xbf16>
    %106 = vector.shape_cast %105 : vector<16x16xbf16> to vector<4x4x16xbf16>
    %c0_106 = arith.constant 0 : index
    %c1_107 = arith.constant 1 : index
    %c1_108 = arith.constant 1 : index
    %c0_109 = arith.constant 0 : index
    %107 = vector.load %arg10[%c0_106, %c1_107, %c1_108, %c0_109] : memref<4x5x5x16xbf16, #tpu.memory_space<vmem>>, vector<1x4x4x16xbf16>
    %108 = vector.shape_cast %107 : vector<1x4x4x16xbf16> to vector<4x4x16xbf16>
    %109 = vector.shape_cast %106 : vector<4x4x16xbf16> to vector<1x4x4x16xbf16>
    tpu.vector_store %arg10[%c0_106, %c1_107, %c1_108, %c0_109], %109 {strides = array<i32>} : memref<4x5x5x16xbf16, #tpu.memory_space<vmem>>, vector<1x4x4x16xbf16>,
    %c0_110 = arith.constant 0 : index
    %c0_111 = arith.constant 0 : index
    %c0_112 = arith.constant 0 : index
    %c0_113 = arith.constant 0 : index
    %110 = vector.load %arg10[%c0_110, %c0_111, %c0_112, %c0_113] : memref<4x5x5x16xbf16, #tpu.memory_space<vmem>>, vector<1x4x4x16xbf16>
    %111 = vector.shape_cast %110 : vector<1x4x4x16xbf16> to vector<4x4x16xbf16>
    %112 = vector.shape_cast %111 : vector<4x4x16xbf16> to vector<16x16xbf16>
    %c1_114 = arith.constant 1 : index
    %c0_115 = arith.constant 0 : index
    %c0_116 = arith.constant 0 : index
    %c0_117 = arith.constant 0 : index
    %113 = vector.load %arg10[%c1_114, %c0_115, %c0_116, %c0_117] : memref<4x5x5x16xbf16, #tpu.memory_space<vmem>>, vector<1x4x4x16xbf16>
    %114 = vector.shape_cast %113 : vector<1x4x4x16xbf16> to vector<4x4x16xbf16>
    %115 = vector.shape_cast %114 : vector<4x4x16xbf16> to vector<16x16xbf16>
    %c0_118 = arith.constant 0 : index
    %c0_119 = arith.constant 0 : index
    %c1_120 = arith.constant 1 : index
    %c0_121 = arith.constant 0 : index
    %116 = vector.load %arg10[%c0_118, %c0_119, %c1_120, %c0_121] : memref<4x5x5x16xbf16, #tpu.memory_space<vmem>>, vector<1x4x4x16xbf16>
    %117 = vector.shape_cast %116 : vector<1x4x4x16xbf16> to vector<4x4x16xbf16>
    %118 = vector.shape_cast %117 : vector<4x4x16xbf16> to vector<16x16xbf16>
    %c2_122 = arith.constant 2 : index
    %c0_123 = arith.constant 0 : index
    %c0_124 = arith.constant 0 : index
    %c0_125 = arith.constant 0 : index
    %119 = vector.load %arg10[%c2_122, %c0_123, %c0_124, %c0_125] : memref<4x5x5x16xbf16, #tpu.memory_space<vmem>>, vector<1x4x4x16xbf16>
    %120 = vector.shape_cast %119 : vector<1x4x4x16xbf16> to vector<4x4x16xbf16>
    %121 = vector.shape_cast %120 : vector<4x4x16xbf16> to vector<16x16xbf16>
    %c3_126 = arith.constant 3 : index
    %c0_127 = arith.constant 0 : index
    %c0_128 = arith.constant 0 : index
    %c0_129 = arith.constant 0 : index
    %122 = vector.load %arg10[%c3_126, %c0_127, %c0_128, %c0_129] : memref<4x5x5x16xbf16, #tpu.memory_space<vmem>>, vector<1x4x4x16xbf16>
    %123 = vector.shape_cast %122 : vector<1x4x4x16xbf16> to vector<4x4x16xbf16>
    %124 = vector.shape_cast %123 : vector<4x4x16xbf16> to vector<16x16xbf16>
    %c2_130 = arith.constant 2 : index
    %c0_131 = arith.constant 0 : index
    %c1_132 = arith.constant 1 : index
    %c0_133 = arith.constant 0 : index
    %125 = vector.load %arg10[%c2_130, %c0_131, %c1_132, %c0_133] : memref<4x5x5x16xbf16, #tpu.memory_space<vmem>>, vector<1x4x4x16xbf16>
    %126 = vector.shape_cast %125 : vector<1x4x4x16xbf16> to vector<4x4x16xbf16>
    %127 = vector.shape_cast %126 : vector<4x4x16xbf16> to vector<16x16xbf16>
    %c0_134 = arith.constant 0 : index
    %c1_135 = arith.constant 1 : index
    %c0_136 = arith.constant 0 : index
    %c0_137 = arith.constant 0 : index
    %128 = vector.load %arg10[%c0_134, %c1_135, %c0_136, %c0_137] : memref<4x5x5x16xbf16, #tpu.memory_space<vmem>>, vector<1x4x4x16xbf16>
    %129 = vector.shape_cast %128 : vector<1x4x4x16xbf16> to vector<4x4x16xbf16>
    %130 = vector.shape_cast %129 : vector<4x4x16xbf16> to vector<16x16xbf16>
    %c1_138 = arith.constant 1 : index
    %c1_139 = arith.constant 1 : index
    %c0_140 = arith.constant 0 : index
    %c0_141 = arith.constant 0 : index
    %131 = vector.load %arg10[%c1_138, %c1_139, %c0_140, %c0_141] : memref<4x5x5x16xbf16, #tpu.memory_space<vmem>>, vector<1x4x4x16xbf16>
    %132 = vector.shape_cast %131 : vector<1x4x4x16xbf16> to vector<4x4x16xbf16>
    %133 = vector.shape_cast %132 : vector<4x4x16xbf16> to vector<16x16xbf16>
    %c0_142 = arith.constant 0 : index
    %c1_143 = arith.constant 1 : index
    %c1_144 = arith.constant 1 : index
    %c0_145 = arith.constant 0 : index
    %134 = vector.load %arg10[%c0_142, %c1_143, %c1_144, %c0_145] : memref<4x5x5x16xbf16, #tpu.memory_space<vmem>>, vector<1x4x4x16xbf16>
    %135 = vector.shape_cast %134 : vector<1x4x4x16xbf16> to vector<4x4x16xbf16>
    %136 = vector.shape_cast %135 : vector<4x4x16xbf16> to vector<16x16xbf16>
    %137 = tpu.concatenate %112, %115, %118, %121, %124, %127, %130, %133, %136 in 1 : vector<16x16xbf16>, vector<16x16xbf16>, vector<16x16xbf16>, vector<16x16xbf16>, vector<16x16xbf16>, vector<16x16xbf16>, vector<16x16xbf16>, vector<16x16xbf16>, vector<16x16xbf16> -> vector<16x144xbf16>
    %c0_146 = arith.constant 0 : index
    %c0_147 = arith.constant 0 : index
    %138 = vector.load %arg4[%c0_146, %c0_147] : memref<144x32xbf16, #tpu.memory_space<vmem>>, vector<144x32xbf16>
    %cst_148 = arith.constant dense<0.000000e+00> : vector<16x32xf32>
    %139 = tpu.matmul %137, %138, %cst_148 {dimension_numbers = #tpu.dot_dimension_numbers<[1], [0], [0], [1], [0, 0, 1, 1], [], []>} : vector<16x144xbf16>, vector<144x32xbf16>, vector<16x32xf32> -> vector<16x32xf32>
    %c0_149 = arith.constant 0 : index
    %c0_150 = arith.constant 0 : index
    %140 = vector.load %arg5[%c0_149, %c0_150] : memref<1x32xf32, #tpu.memory_space<vmem>>, vector<1x32xf32>
    %141 = vector.broadcast %140 : vector<1x32xf32> to vector<16x32xf32>
    %142 = arith.addf %139, %141 : vector<16x32xf32>
    %cst_151 = arith.constant 0.000000e+00 : f32
    %143 = vector.broadcast %cst_151 : f32 to vector<16x32xf32>
    %144 = arith.maximumf %142, %143 : vector<16x32xf32>
    %145 = arith.truncf %144 : vector<16x32xf32> to vector<16x32xbf16>
    %c0_152 = arith.constant 0 : index
    %c0_153 = arith.constant 0 : index
    %146 = vector.load %arg6[%c0_152, %c0_153] : memref<5x32xbf16, #tpu.memory_space<vmem>>, vector<5x32xbf16>
    %cst_154 = arith.constant dense<0.000000e+00> : vector<5x16xf32>
    %147 = tpu.matmul %146, %145, %cst_154 {dimension_numbers = #tpu.dot_dimension_numbers<[1], [1], [0], [0], [0, 0, 1, 0], [], []>} : vector<5x32xbf16>, vector<16x32xbf16>, vector<5x16xf32> -> vector<5x16xf32>
    %c0_155 = arith.constant 0 : index
    %c0_156 = arith.constant 0 : index
    %148 = vector.load %arg7[%c0_155, %c0_156] : memref<5x1xf32, #tpu.memory_space<vmem>>, vector<5x1xf32>
    %149 = vector.broadcast %148 : vector<5x1xf32> to vector<5x16xf32>
    %150 = arith.addf %147, %149 : vector<5x16xf32>
    %151 = arith.truncf %150 : vector<5x16xf32> to vector<5x16xbf16>
    %c0_157 = arith.constant 0 : index
    %c0_158 = arith.constant 0 : index
    %152 = vector.load %arg8[%c0_157, %c0_158] : memref<16x256xbf16, #tpu.memory_space<vmem>>, vector<16x256xbf16>
    %cst_159 = arith.constant dense<0.000000e+00> : vector<5x256xf32>
    %153 = tpu.matmul %151, %152, %cst_159 {dimension_numbers = #tpu.dot_dimension_numbers<[1], [0], [0], [1], [0, 0, 1, 1], [], []>} : vector<5x16xbf16>, vector<16x256xbf16>, vector<5x256xf32> -> vector<5x256xf32>
    %c0_160 = arith.constant 0 : index
    %c0_161 = arith.constant 0 : index
    %c0_162 = arith.constant 0 : index
    %154 = vector.load %arg9[%c0_160, %c0_161, %c0_162] : memref<1x5x256xf32, #tpu.memory_space<vmem>>, vector<1x5x256xf32>
    %155 = vector.shape_cast %154 : vector<1x5x256xf32> to vector<5x256xf32>
    %156 = vector.shape_cast %153 : vector<5x256xf32> to vector<1x5x256xf32>
    tpu.vector_store %arg9[%c0_160, %c0_161, %c0_162], %156 {strides = array<i32>} : memref<1x5x256xf32, #tpu.memory_space<vmem>>, vector<1x5x256xf32>,
    return
  }
  func.func @transform_0(%arg0: i32) -> (i32, i32, i32, i32) {
    %c0_i32 = arith.constant 0 : i32
    %c0_i32_0 = arith.constant 0 : i32
    %c0_i32_1 = arith.constant 0 : i32
    %c0_i32_2 = arith.constant 0 : i32
    return %arg0, %c0_i32, %c0_i32_0, %c0_i32_1 : i32, i32, i32, i32
  }
  func.func @transform_1(%arg0: i32) -> (i32, i32) {
    %c0_i32 = arith.constant 0 : i32
    %c0_i32_0 = arith.constant 0 : i32
    %c0_i32_1 = arith.constant 0 : i32
    return %c0_i32, %c0_i32_0 : i32, i32
  }
  func.func @transform_2(%arg0: i32) -> (i32, i32) {
    %c0_i32 = arith.constant 0 : i32
    %c0_i32_0 = arith.constant 0 : i32
    %c0_i32_1 = arith.constant 0 : i32
    return %c0_i32, %c0_i32_0 : i32, i32
  }
  func.func @transform_3(%arg0: i32) -> (i32, i32) {
    %c0_i32 = arith.constant 0 : i32
    %c0_i32_0 = arith.constant 0 : i32
    %c0_i32_1 = arith.constant 0 : i32
    return %c0_i32, %c0_i32_0 : i32, i32
  }
  func.func @transform_4(%arg0: i32) -> (i32, i32) {
    %c0_i32 = arith.constant 0 : i32
    %c0_i32_0 = arith.constant 0 : i32
    %c0_i32_1 = arith.constant 0 : i32
    return %c0_i32, %c0_i32_0 : i32, i32
  }
  func.func @transform_5(%arg0: i32) -> (i32, i32) {
    %c0_i32 = arith.constant 0 : i32
    %c0_i32_0 = arith.constant 0 : i32
    %c0_i32_1 = arith.constant 0 : i32
    return %c0_i32, %c0_i32_0 : i32, i32
  }
  func.func @transform_6(%arg0: i32) -> (i32, i32) {
    %c0_i32 = arith.constant 0 : i32
    %c0_i32_0 = arith.constant 0 : i32
    %c0_i32_1 = arith.constant 0 : i32
    return %c0_i32, %c0_i32_0 : i32, i32
  }
  func.func @transform_7(%arg0: i32) -> (i32, i32) {
    %c0_i32 = arith.constant 0 : i32
    %c0_i32_0 = arith.constant 0 : i32
    %c0_i32_1 = arith.constant 0 : i32
    return %c0_i32, %c0_i32_0 : i32, i32
  }
  func.func @transform_8(%arg0: i32) -> (i32, i32, i32) {
    %c0_i32 = arith.constant 0 : i32
    %c0_i32_0 = arith.constant 0 : i32
    %c0_i32_1 = arith.constant 0 : i32
    return %arg0, %c0_i32, %c0_i32_0 : i32, i32, i32
  }
}

</mosaic_0001>

<bundles_post_ra>
// kernel: _forward.1
= control target key start
LH: loop header
LB: loop body
LE: loop exit
PB: predicated region body
PF: predicated region fallthrough
CT: control target
= control target key end

     0   :  { %s3190_s27 = smov 0   ;;  %s3681_s0 = inlined_call_operand.vmem [shape: bf16[32,5,5,4], index: 0, kind: input, shape index: {}]   ;;  %s3682_s1 = inlined_call_operand.vmem [shape: bf16[36,16], index: 1, kind: input, shape index: {}]   ;;  %s3683_s2 = inlined_call_operand.vmem [shape: f32[1,16], index: 2, kind: input, shape index: {}]   ;;  %s3684_s3 = inlined_call_operand.vmem [shape: bf16[144,32], index: 3, kind: input, shape index: {}]   ;;  %s3685_s4 = inlined_call_operand.vmem [shape: f32[1,32], index: 4, kind: input, shape index: {}]   ;;  %s3686_s5 = inlined_call_operand.vmem [shape: bf16[5,32], index: 5, kind: input, shape index: {}]   ;;  %s3687_s6 = inlined_call_operand.vmem [shape: f32[5,1], index: 6, kind: input, shape index: {}]   ;;  %s3688_s7 = inlined_call_operand.vmem [shape: bf16[16,256], index: 7, kind: input, shape index: {}]   ;;  %s3689_s8 = inlined_call_operand.vmem [shape: f32[2,5,256], index: 8, kind: output, shape index: {}]  }
   0x1 LB: > { %s3196_s28 = sadd.s32 4294967295, %s3126_s27   ;;  %p2784_p0 = scmp.ge.s32.totalorder %s3126_s27, 1  ;;  %s3126_s27 = sphi %s3190_s27, %s18_s27  }
   0x2   : > { %p264_p1 = scmp.lt.s32.totalorder %s3126_s27, 3 }
   0x4   : > { %p265_p2 = pnand %p2784_p0, %p264_p1 }
   0x5   : > { %s2785_s29 = sshll.u32 (!%p265_p2), %s3196_s28, 4  ;;  %v365_v0 = vlaneseq (!%p265_p2)  ;;  %v3128_v1 = vmov (!%p265_p2), 1983009808   ;;  %s3129_s12 = smov (!%p265_p2), 4   ;;  %vm631_vm0 = vsmask.f32 (!%p265_p2), 1280 }
   0x6   : > { %268 = sbr.rel (%p265_p2) target bundleno = 1268 (0x4f4), region = 52  ;;  %p300_p3 = scmp.lt.s32.totalorder (!%p265_p2), %s2785_s29, 31  ;;  %v363_v2 = vunpack.c.l.s4 (!%p265_p2), %v3128_v1  ;;  %vm632_vm1 = vsmask.f32 (!%p265_p2), 3336  ;;  %vm634_vm2 = vsmask.f32 (!%p265_p2), 5392 }
   0x7   : > { %v366_v4 = vshrl.u32 (!%p265_p2), %v365_v0, 7  ;;  %s3130_s13 = smov (!%p265_p2), 12   ;;  %s3131_s14 = smov (!%p265_p2), 8   ;;  %vm636_vm3 = vsmask.f32 (!%p265_p2), 7448  ;;  %vm633_vm4 = vmor (!%p265_p2), %vm631_vm0, %vm632_vm1  ;;  %v3041_v52 = vld [vmem:[%s3682_s1] sm:$0xff] (!%p265_p2)  }
   0x8   : > { %v364_v3 = vunpack.c.0.s8 (!%p265_p2), %v363_v2  ;;  %s3132_s15 = smov (!%p265_p2), 16   ;;  %s3133_s16 = smov (!%p265_p2), 20   ;;  %vm3254_vm5 = vmor (!%p265_p2), %vm633_vm4, %vm634_vm2  ;;  %2952 = vmatprep.subr.bf16.mxu0 (!%p265_p2), %v3041_v52  ;;  %vm1579_vm7 = vcmask (!%p265_p2), 1041408   ;;  %vm561_vm8 = vcmask (!%p265_p2), 31744   ;;  %vm565_vm9 = vcmask (!%p265_p2), 64512  }
   0x9   : > { %s3134_s17 = smov (!%p265_p2), 24   ;;  %s3135_s20 = smov (!%p265_p2), 28   ;;  %vm3271_vm6 = vmor (!%p265_p2), %vm3254_vm5, %vm636_vm3  ;;  %2953 = vmatpush3.bf16.msra.mxu0 (!%p265_p2), %v3041_v52  ;;  %vm568_vm10 = vcmask (!%p265_p2), 97280   ;;  %vm571_vm11 = vcmask (!%p265_p2), 130048   ;;  %vm574_vm12 = vcmask (!%p265_p2), 162816   ;;  %vm577_vm13 = vcmask (!%p265_p2), 195584  }
   0xa   : > { %v3206_v5 = vsub.s32 (!%p265_p2), %v364_v3, %v366_v4  ;;  %s3136_s23 = smov (!%p265_p2), 32   ;;  %vm580_vm14 = vcmask (!%p265_p2), 228352   ;;  %vm583_vm15 = vcmask (!%p265_p2), 261120   ;;  %vm1570_vm0 = vcmask (!%p265_p2), 293888   ;;  %s3140_s9 = smov (!%p265_p2), 80  }
   0xb   : > { %vm1660_vm1 = vcmask (!%p265_p2), 124928   ;;  %vm1661_vm2 = vsmask.f32 (!%p265_p2), 2304  ;;  %vm1746_vm4 = vcmask (!%p265_p2), 123904   ;;  %vm1830_vm5 = vsmask.f32 (!%p265_p2), 2306 }
   0xc   : > { %vm3449_vm3 = vmand (!%p265_p2), %vm1660_vm1, %vm1661_vm2  ;;  %s3141_s10 = smov (!%p265_p2), 112   ;;  %p306_p4 = scmp.lt.s32.totalorder (!%p265_p2), %s3196_s28, 1 }
   0xd   : > { %s3699_s29 = smov (!%p300_p3, %s2785_s29), 31 }
   0xe   : > { %s2973_s30 = smul.u32 20, %s3699_s29  ;;  %s3701_s28 = smov (!%p306_p4, %s3196_s28), 1 }
   0xf   : > { %s2942_s22 = sshll.u32 %s3701_s28, 4 }
  0x10   : > { %s3204_s11 = scalar_lea.vmem %s3681_s0, %s2973_s30  ;;  %s310_s26 = scalar_lea.vmem %s3689_s8, %s2942_s22 }
  0x11   : > { %v3068_v6 = vld.sshfl [vmem:[%s3204_s11 + $0x3c] sm:$0xf pattern:$0x76325410] }
  0x12   : > { %v3069_v7 = vld.sshfl [vmem:[%s3204_s11 + $0x44] sm:$0xf pattern:$0x76325410] }
  0x13   : > { %v3070_v8 = vld.sshfl [vmem:[%s3204_s11 + $0x14] sm:$0xf pattern:$0x76325410]  ;;  %v916_v10 = vcombine.low %v3068_v6, %v3069_v7 }
  0x14   : > { %v3071_v9 = vld.sshfl [vmem:[%s3204_s11 + $0x1c] sm:$0xf pattern:$0x76325410] }
  0x15   : > { %v3072_v11 = vld.sshfl [vmem:[%s3204_s11 + $0x50] sm:$0xf pattern:$0x76325410]  ;;  %917 = vrot.lane.b32.xlu1 %v916_v10, %s3129_s12  ;;  %v397_v13 = vcombine.low %v3070_v8, %v3071_v9 }
  0x16   : > { %v3073_v12 = vld.sshfl [vmem:[%s3204_s11 + $0x58] sm:$0xf pattern:$0x76325410] }
  0x17   : > { %v3074_v14 = vld.sshfl [vmem:[%s3204_s11 + $0x28] sm:$0xf pattern:$0x76325410]  ;;  %398 = vrot.lane.b32.xlu0 %v397_v13, %s3129_s12  ;;  %v443_v16 = vcombine.low %v3072_v11, %v3073_v12 }
  0x18   : > { %v3075_v15 = vld.sshfl [vmem:[%s3204_s11 + $0x30] sm:$0xf pattern:$0x76325410] }
  0x19   : > { %v3076_v17 = vld.sshfl [vmem:[%s3204_s11 + $0x64] sm:$0xf pattern:$0x76325410]  ;;  %444 = vrot.lane.b32.xlu1 %v443_v16, %s3130_s13  ;;  %v3221_v19 = vcombine.low %v3074_v14, %v3075_v15 }
  0x1a   : > { %v3077_v18 = vld.sshfl [vmem:[%s3204_s11 + $0x6c] sm:$0xf pattern:$0x76325410] }
  0x1b   : > { %v3078_v20 = vld.sshfl [vmem:[%s3204_s11 + $0x78] sm:$0xf pattern:$0x76325410]  ;;  %421 = vrot.lane.b32.xlu0 %v3221_v19, %s3131_s14  ;;  %v466_v22 = vcombine.low %v3076_v17, %v3077_v18  ;;  %v3042_v15 = vld [vmem:[%s3682_s1 + $0x8] sm:$0xff]  }
  0x1c   : > { %v3079_v21 = vld.sshfl [vmem:[%s3204_s11 + $0x80] sm:$0xf pattern:$0x76325410]  ;;  %2954 = vmatprep.subr.bf16.mxu0 %v3042_v15 }
  0x1d   : > { %v3080_v23 = vld.sshfl [vmem:[%s3204_s11 + $0x8c] sm:$0xf pattern:$0x76325410]  ;;  %467 = vrot.lane.b32.xlu1 %v466_v22, %s3132_s15  ;;  %v489_v25 = vcombine.low %v3078_v20, %v3079_v21  ;;  %2955 = vmatpush3.bf16.msra.mxu0 %v3042_v15 }
  0x1e   : > { %v3081_v24 = vld.sshfl [vmem:[%s3204_s11 + $0x94] sm:$0xf pattern:$0x76325410] }
  0x1f   : > { %v3082_v26 = vld.sshfl [vmem:[%s3204_s11 + $0xa0] sm:$0xf pattern:$0x76325410]  ;;  %938 = vrot.lane.b32.xlu0 %v489_v25, %s3130_s13  ;;  %v960_v28 = vcombine.low %v3080_v23, %v3081_v24 }
  0x20   : > { %v3083_v27 = vld.sshfl [vmem:[%s3204_s11 + $0xa8] sm:$0xf pattern:$0x76325410] }
  0x21   : > { %v3084_v29 = vld.sshfl [vmem:[%s3204_s11 + $0xc8] sm:$0xf pattern:$0x76325410]  ;;  %490 = vrot.lane.b32.xlu1 %v489_v25, %s3133_s16  ;;  %v3236_v31 = vcombine.low %v3082_v26, %v3083_v27 }
  0x22   : > { %v3085_v30 = vld.sshfl [vmem:[%s3204_s11 + $0xd0] sm:$0xf pattern:$0x76325410] }
  0x23   : > { %v3086_v32 = vld.sshfl [vmem:[%s3204_s11 + $0xb4] sm:$0xf pattern:$0x76325410]  ;;  %961 = vrot.lane.b32.xlu0 %v960_v28, %s3132_s15  ;;  %v3242_v35 = vcombine.low %v3084_v29, %v3085_v30 }
  0x24   : > { %v3087_v33 = vld.sshfl [vmem:[%s3204_s11 + $0xbc] sm:$0xf pattern:$0x76325410] }
  0x25   : > { %v2825_v34 = vld.sshfl [vmem:[%s3204_s11] sm:$0x13 pattern:$0x76325410]  ;;  %513 = vrot.lane.b32.xlu1 %v3236_v31, %s3134_s17  ;;  %v3250_v42 = vcombine.low %v3086_v32, %v3087_v33 }
  0x26   : > { %v2826_v36 = vld.sshfl [vmem:[%s3204_s11 + $0x4] sm:$0x13 pattern:$0x76325410]  ;;  %v606_v37 = vcombine.high %v2825_v34, %v2825_v34  ;;  %v639_v40 = vshrl.u32 %v2825_v34, 16  ;;  %v642_v41 = vshll.u32 %v2825_v34, 16 }
  0x27   : > { %v2827_v38 = vld.sshfl [vmem:[%s3204_s11 + $0x8] sm:$0x13 pattern:$0x76325410]  ;;  %v614_v39 = vcombine.high %v2826_v36, %v2826_v36  ;;  %v653_v46 = vshrl.u32 %v2826_v36, 16  ;;  %v656_v51 = vshll.u32 %v2826_v36, 16  ;;  %982 = vrot.lane.b32.xlu0 %v3242_v35, %s3134_s17 }
  0x28   : > { %v2828_v43 = vld.sshfl [vmem:[%s3204_s11 + $0xc] sm:$0x13 pattern:$0x76325410]  ;;  %v622_v44 = vcombine.high %v2827_v38, %v2827_v38  ;;  %v648_v45 = vshll.u32 %v606_v37, 16  ;;  %v641_v49 = vrot.slane %v639_v40, 6 }
  0x29   : > { %v630_v47 = vcombine.high %v2828_v43, %v2828_v43  ;;  %v644_v50 = vrot.slane %v642_v41, 7  ;;  %v655_v54 = vrot.slane %v653_v46, 6  ;;  %v662_v55 = vshll.u32 %v614_v39, 16  ;;  %536 = vrot.lane.b32.xlu1 %v3250_v42, %s3135_s20 }
  0x2a   : > { %v650_v53 = vrot.slane %v648_v45, 7  ;;  %v667_v56 = vshrl.u32 %v2827_v38, 16  ;;  %v658_v58 = vrot.slane %v656_v51, 7  ;;  %v670_v59 = vshll.u32 %v2827_v38, 16 }
  0x2b   : > { %v645_v57 = vor.u32 %v644_v50, %v641_v49  ;;  %v676_v60 = vshll.u32 %v622_v44, 16  ;;  %v3264_v61 = vld.sshfl [vmem:[%s3204_s11 + $0xdc] sm:$0xf pattern:$0x76325410]  ;;  %v681_v0 = vshrl.u32 %v2828_v43, 16 }
  0x2c   : > { %v669_v63 = vrot.slane %v667_v56, 6  ;;  %v684_v1 = vshll.u32 %v2828_v43, 16  ;;  %v659_v3 = vor.u32 %v658_v58, %v655_v54  ;;  %v664_v4 = vrot.slane %v662_v55, 7 }
  0x2d   : > { %v646_v2 = vrot.slane %v645_v57, 2  ;;  %v672_v6 = vrot.slane %v670_v59, 7  ;;  %v678_v7 = vrot.slane %v676_v60, 7  ;;  %v683_v8 = vrot.slane %v681_v0, 6  ;;  %559 = vrot.lane.b32.xlu1 %v3242_v35, %s3136_s23 }
  0x2e   : > { %v686_v9 = vrot.slane %v684_v1, 7  ;;  %v690_v10 = vshll.u32 %v630_v47, 16  ;;  %v660_v12 = vrot.slane %v659_v3, 2 }
  0x2f   : > { %v651_v11 = vsel %vm3271_vm6, %v646_v2, %v650_v53  ;;  %v673_v13 = vor.u32 %v672_v6, %v669_v63  ;;  %v2837_v14 = vld.sshfl [vmem:[%s3204_s11 + $0x50] sm:$0x13 pattern:$0x76325410] }
  0x30   : > { %v687_v16 = vor.u32 %v686_v9, %v683_v8  ;;  %v692_v17 = vrot.slane %v690_v10, 7  ;;  %v2838_v18 = vld.sshfl [vmem:[%s3204_s11 + $0x54] sm:$0x13 pattern:$0x76325410]  ;;  %v714_v20 = vcombine.high %v2837_v14, %v2837_v14  ;;  %v740_v21 = vshrl.u32 %v2837_v14, 16 }
  0x31   : > { %v3286_v22 = vsel %vm3271_vm6, %v660_v12, %v664_v4  ;;  %v674_v23 = vrot.slane %v673_v13, 2  ;;  %v2839_v24 = vld.sshfl [vmem:[%s3204_s11 + $0x58] sm:$0x13 pattern:$0x76325410]  ;;  %v722_v25 = vcombine.high %v2838_v18, %v2838_v18  ;;  %v743_v26 = vshll.u32 %v2837_v14, 16 }
  0x32   : > { %v688_v27 = vrot.slane %v687_v16, 2  ;;  %v919_v28 = vcombine.low %v651_v11, %v3286_v22  ;;  %v2840_v29 = vld.sshfl [vmem:[%s3204_s11 + $0x5c] sm:$0x13 pattern:$0x76325410]  ;;  %v730_v30 = vcombine.high %v2839_v24, %v2839_v24  ;;  %v742_v32 = vrot.slane %v740_v21, 6 }
  0x33   : > { %v3293_v33 = vsel %vm3271_vm6, %v674_v23, %v678_v7  ;;  %v738_v34 = vcombine.high %v2840_v29, %v2840_v29  ;;  %v745_v36 = vrot.slane %v743_v26, 7  ;;  %v749_v37 = vshll.u32 %v714_v20, 16  ;;  %v2849_v59 = vld.sshfl [vmem:[%s3204_s11 + $0xa0] sm:$0x13 pattern:$0x76325410] }
  0x34   : > { %v3297_v38 = vsel %vm3271_vm6, %v688_v27, %v692_v17  ;;  %v927_v39 = vrot.slane %v919_v28, %v3206_v5  ;;  %v754_v40 = vshrl.u32 %v2838_v18, 16  ;;  %v757_v41 = vshll.u32 %v2838_v18, 16  ;;  %v2850_v60 = vld.sshfl [vmem:[%s3204_s11 + $0xa4] sm:$0x13 pattern:$0x76325410] }
  0x35   : > { %v920_v43 = vcombine.low %v3293_v33, %v3297_v38  ;;  %v746_v44 = vor.u32 %v745_v36, %v742_v32  ;;  %v751_v45 = vrot.slane %v749_v37, 7  ;;  %v763_v46 = vshll.u32 %v722_v25, 16  ;;  %v2851_v63 = vld.sshfl [vmem:[%s3204_s11 + $0xa8] sm:$0x13 pattern:$0x76325410] }
  0x36   : > { %v756_v47 = vrot.slane %v754_v40, 6  ;;  %v759_v48 = vrot.slane %v757_v41, 7  ;;  %v768_v49 = vshrl.u32 %v2839_v24, 16  ;;  %v771_v50 = vshll.u32 %v2839_v24, 16 }
  0x37   : > { %v934_v51 = vrot.slane %v920_v43, %v3206_v5  ;;  %v747_v52 = vrot.slane %v746_v44, 2  ;;  %v765_v53 = vrot.slane %v763_v46, 7  ;;  %v777_v54 = vshll.u32 %v730_v30, 16 }
  0x38   : > { %v760_v55 = vor.u32 %v759_v48, %v756_v47  ;;  %v770_v56 = vrot.slane %v768_v49, 6  ;;  %v773_v57 = vrot.slane %v771_v50, 7  ;;  %v782_v58 = vshrl.u32 %v2840_v29, 16 }
  0x39   : > { %v935_v0 = vcombine.low %v927_v39, %v934_v51  ;;  %v752_v1 = vsel %vm3271_vm6, %v747_v52, %v751_v45  ;;  %v779_v2 = vrot.slane %v777_v54, 7  ;;  %v785_v3 = vshll.u32 %v2840_v29, 16  ;;  %v2852_v4 = vld.sshfl [vmem:[%s3204_s11 + $0xac] sm:$0x13 pattern:$0x76325410] }
  0x3a   : > { %v761_v6 = vrot.slane %v760_v55, 2  ;;  %v774_v7 = vor.u32 %v773_v57, %v770_v56  ;;  %v784_v8 = vrot.slane %v782_v58, 6  ;;  %v791_v9 = vshll.u32 %v738_v34, 16 }
  0x3b   : > { %936 = vrot.lane.b32.xlu0 %v935_v0, %s3131_s14  ;;  %v787_v10 = vrot.slane %v785_v3, 7  ;;  %v815_v11 = vcombine.high %v2849_v59, %v2849_v59  ;;  %v823_v12 = vcombine.high %v2850_v60, %v2850_v60  ;;  %v831_v13 = vcombine.high %v2851_v63, %v2851_v63  ;;  %v3089_v28 = vld.sshfl [vmem:[%s3204_s11 + $0xe4] sm:$0xf pattern:$0x76325410] }
  0x3c   : > { %v766_v14 = vsel %vm3271_vm6, %v761_v6, %v765_v53  ;;  %v775_v15 = vrot.slane %v774_v7, 2  ;;  %v793_v16 = vrot.slane %v791_v9, 7  ;;  %v839_v17 = vcombine.high %v2852_v4, %v2852_v4  ;;  %v3327_v6 = vld.sshfl [vmem:[%s3204_s11 + $0xf8] sm:$0xf pattern:$0x76325410] }
  0x3d   : > { %v788_v18 = vor.u32 %v787_v10, %v784_v8  ;;  %v963_v20 = vcombine.low %v752_v1, %v766_v14  ;;  %v841_v21 = vshrl.u32 %v2849_v59, 16  ;;  %v844_v23 = vshll.u32 %v2849_v59, 16  ;;  %v3330_v7 = vld.sshfl [vmem:[%s3204_s11 + $0x104] sm:$0xf pattern:$0x76325410] }
  0x3e   : > { %v780_v24 = vsel %vm3271_vm6, %v775_v15, %v779_v2  ;;  %v850_v25 = vshll.u32 %v815_v11, 16  ;;  %v855_v26 = vshrl.u32 %v2850_v60, 16  ;;  %v858_v27 = vshll.u32 %v2850_v60, 16 }
  0x3f   : > { %v789_v29 = vrot.slane %v788_v18, 2  ;;  %v971_v30 = vrot.slane %v963_v20, %v3206_v5  ;;  %v843_v32 = vrot.slane %v841_v21, 6  ;;  %v846_v34 = vrot.slane %v844_v23, 7 }
  0x40   : > { %v852_v36 = vrot.slane %v850_v25, 7  ;;  %v857_v37 = vrot.slane %v855_v26, 6  ;;  %v860_v39 = vrot.slane %v858_v27, 7  ;;  %v864_v40 = vshll.u32 %v823_v12, 16 }
  0x41   : > { %v794_v41 = vsel %vm3271_vm6, %v789_v29, %v793_v16  ;;  %v847_v43 = vor.u32 %v846_v34, %v843_v32  ;;  %v869_v44 = vshrl.u32 %v2851_v63, 16  ;;  %v872_v45 = vshll.u32 %v2851_v63, 16  ;;  %v3320_v63 = vld.sshfl [vmem:[%s3204_s11 + $0xf0] sm:$0xf pattern:$0x76325410] }
  0x42   : > { %v964_v46 = vcombine.low %v780_v24, %v794_v41  ;;  %v861_v47 = vor.u32 %v860_v39, %v857_v37  ;;  %v866_v48 = vrot.slane %v864_v40, 7  ;;  %v878_v49 = vshll.u32 %v831_v13, 16  ;;  %v3093_v11 = vld.sshfl [vmem:[%s3204_s11 + $0x118] sm:$0xf pattern:$0x76325410] }
  0x43   : > { %v848_v50 = vrot.slane %v847_v43, 2  ;;  %v871_v51 = vrot.slane %v869_v44, 6  ;;  %v874_v52 = vrot.slane %v872_v45, 7  ;;  %v883_v53 = vshrl.u32 %v2852_v4, 16 }
  0x44   : > { %v978_v54 = vrot.slane %v964_v46, %v3206_v5  ;;  %v862_v55 = vrot.slane %v861_v47, 2  ;;  %v886_v56 = vshll.u32 %v2852_v4, 16  ;;  %v880_v58 = vrot.slane %v878_v49, 7 }
  0x45   : > { %v875_v57 = vor.u32 %v874_v52, %v871_v51  ;;  %v885_v59 = vrot.slane %v883_v53, 6  ;;  %v892_v60 = vshll.u32 %v839_v17, 16  ;;  %v853_v1 = vsel %vm3271_vm6, %v848_v50, %v852_v36  ;;  %v3094_v15 = vld.sshfl [vmem:[%s3204_s11 + $0x120] sm:$0xf pattern:$0x76325410] }
  0x46   : > { %v979_v0 = vcombine.low %v971_v30, %v978_v54  ;;  %v867_v2 = vsel %vm3271_vm6, %v862_v55, %v866_v48  ;;  %v888_v3 = vrot.slane %v886_v56, 7  ;;  %v1004_v10 = vcombine.low %v3264_v61, %v3089_v28  ;;  %v2885_v16 = vld.sshfl [vmem:[%s3204_s11 + $0xf0] sm:$0x13 pattern:$0x76325410] }
  0x47   : > { %v876_v4 = vrot.slane %v875_v57, 2  ;;  %v894_v9 = vrot.slane %v892_v60, 7  ;;  %v1007_v12 = vcombine.low %v853_v1, %v867_v2  ;;  %v2886_v18 = vld.sshfl [vmem:[%s3204_s11 + $0xf4] sm:$0x13 pattern:$0x76325410]  ;;  %v1252_v20 = vcombine.high %v2885_v16, %v2885_v16 }
  0x48   : > { %980 = vrot.lane.b32.xlu0 %v979_v0, %s3133_s16  ;;  %v889_v8 = vor.u32 %v888_v3, %v885_v59  ;;  %v1278_v21 = vshrl.u32 %v2885_v16, 16  ;;  %v2887_v24 = vld.sshfl [vmem:[%s3204_s11 + $0xf8] sm:$0x13 pattern:$0x76325410]  ;;  %v1260_v26 = vcombine.high %v2886_v18, %v2886_v18  ;;  %v1281_v28 = vshll.u32 %v2885_v16, 16 }
  0x49   : > { %v881_v13 = vsel %vm3271_vm6, %v876_v4, %v880_v58  ;;  %v1015_v61 = vrot.slane %v1007_v12, %v3206_v5  ;;  %v2888_v25 = vld.sshfl [vmem:[%s3204_s11 + $0xfc] sm:$0x13 pattern:$0x76325410]  ;;  %v1268_v32 = vcombine.high %v2887_v24, %v2887_v24  ;;  %v1287_v36 = vshll.u32 %v1252_v20, 16 }
  0x4a   : > { %v890_v14 = vrot.slane %v889_v8, 2  ;;  %v1280_v27 = vrot.slane %v1278_v21, 6  ;;  %v3348_v30 = vld.sshfl [vmem:[%s3204_s11 + $0x10c] sm:$0xf pattern:$0x76325410]  ;;  %v1276_v34 = vcombine.high %v2888_v25, %v2888_v25  ;;  %v1097_v2 = vcombine.low %v3320_v63, %v3327_v6 }
  0x4b   : > { %v1283_v37 = vrot.slane %v1281_v28, 7  ;;  %v1292_v39 = vshrl.u32 %v2886_v18, 16  ;;  %v1295_v40 = vshll.u32 %v2886_v18, 16  ;;  %v1301_v41 = vshll.u32 %v1260_v26, 16 }
  0x4c   : > { %v895_v17 = vsel %vm3271_vm6, %v890_v14, %v894_v9  ;;  %1005 = vrot.lane.b32.xlu0 %v1004_v10, %s3135_s20  ;;  %v3353_v44 = vld.sshfl [vmem:[%s3204_s11 + $0x12c] sm:$0xf pattern:$0x76325410]  ;;  %v1289_v45 = vrot.slane %v1287_v36, 7  ;;  %v1306_v46 = vshrl.u32 %v2887_v24, 16  ;;  %v1143_v12 = vcombine.low %v3093_v11, %v3094_v15 }
  0x4d   : > { %v1008_v23 = vcombine.low %v881_v13, %v895_v17  ;;  %v1309_v47 = vshll.u32 %v2887_v24, 16  ;;  %v3097_v48 = vld.sshfl [vmem:[%s3204_s11 + $0x134] sm:$0xf pattern:$0x76325410]  ;;  %v1284_v49 = vor.u32 %v1283_v37, %v1280_v27  ;;  %v1294_v50 = vrot.slane %v1292_v39, 6 }
  0x4e   : > { %v1297_v51 = vrot.slane %v1295_v40, 7  ;;  %v1303_v52 = vrot.slane %v1301_v41, 7  ;;  %v1308_v53 = vrot.slane %v1306_v46, 6  ;;  %v1320_v55 = vshrl.u32 %v2888_v25, 16 }
  0x4f   : > { %v1022_v29 = vrot.slane %v1008_v23, %v3206_v5  ;;  %v1311_v54 = vrot.slane %v1309_v47, 7  ;;  %v1285_v56 = vrot.slane %v1284_v49, 2  ;;  %v1323_v58 = vshll.u32 %v2888_v25, 16  ;;  %v3043_v26 = vld [vmem:[%s3682_s1 + $0x10] ss:$0 sps:$4 sm:$0x33]  }
  0x50   : > { %1073 = vrot.lane.b32.xlu0 %v3250_v42, %s3129_s12  ;;  %v1315_v42 = vshll.u32 %v1268_v32, 16  ;;  %v1298_v57 = vor.u32 %v1297_v51, %v1294_v50  ;;  %v1329_v59 = vshll.u32 %v1276_v34, 16  ;;  %v1322_v1 = vrot.slane %v1320_v55, 6  ;;  %2972 = vmatprep.subr.msk.bf16.mxu0 %vm1579_vm7, %v3043_v26 }
  0x51   : > { %v1023_v43 = vcombine.low %v1015_v61, %v1022_v29  ;;  %v1312_v60 = vor.u32 %v1311_v54, %v1308_v53  ;;  %v1290_v3 = vsel %vm3271_vm6, %v1285_v56, %v1289_v45  ;;  %v1325_v8 = vrot.slane %v1323_v58, 7  ;;  %v2900_v63 = vld.sshfl [vmem:[%s3204_s11 + $0x10] sm:$0x13 pattern:$0x76325410] }
  0x52   : > { %v1317_v0 = vrot.slane %v1315_v42, 7  ;;  %v1299_v4 = vrot.slane %v1298_v57, 2  ;;  %v3098_v6 = vld.sshfl [vmem:[%s3204_s11 + $0x4] sm:$0xf pattern:$0x76325410]  ;;  %v1377_v61 = vcombine.high %v2900_v63, %v2900_v63  ;;  %v1120_v15 = vcombine.low %v3330_v7, %v3348_v30 }
  0x53   : > { %1024 = vrot.lane.b32.xlu1 %v1023_v43, %s3136_s23  ;;  %v1313_v9 = vrot.slane %v1312_v60, 2  ;;  %v1326_v14 = vor.u32 %v1325_v8, %v1322_v1  ;;  %v3099_v16 = vld.sshfl [vmem:[%s3204_s11 + $0xc] sm:$0xf pattern:$0x76325410]  ;;  %v1421_v24 = vshrl.u32 %v2900_v63, 16  ;;  %v1460_v25 = vcombine.low %v3353_v44, %v3097_v48 }
  0x54   : > { %1434 = vrot.lane.b32.xlu0 %v1004_v10, %s3129_s12  ;;  %v1331_v10 = vrot.slane %v1329_v59, 7  ;;  %v1304_v13 = vsel %vm3271_vm6, %v1299_v4, %v1303_v52  ;;  %v3100_v21 = vld.sshfl [vmem:[%s3204_s11 + $0x2c] sm:$0xf pattern:$0x76325410]  ;;  %v1424_v11 = vshll.u32 %v2900_v63, 16  ;;  %v1166_v47 = vcombine.low %v3098_v6, %v3099_v16 }
  0x55   : > { %v1318_v17 = vsel %vm3271_vm6, %v1313_v9, %v1317_v0  ;;  %v1463_v18 = vcombine.low %v1290_v3, %v1304_v13  ;;  %v1327_v20 = vrot.slane %v1326_v14, 2  ;;  %v3101_v23 = vld.sshfl [vmem:[%s3204_s11 + $0x34] sm:$0xf pattern:$0x76325410]  ;;  %v1423_v28 = vrot.slane %v1421_v24, 6 }
  0x56   : > { %v1426_v29 = vrot.slane %v1424_v11, 7  ;;  %v1430_v32 = vshll.u32 %v1377_v61, 16  ;;  %v3102_v34 = vld.sshfl [vmem:[%s3204_s11 + $0x18] sm:$0xf pattern:$0x76325410]  ;;  %v1212_v48 = vcombine.low %v3100_v21, %v3101_v23  ;;  %v1507_v51 = vcombine.low %v3286_v22, %v3293_v33 }
  0x57   : > { %1075 = vrot.lane.b32.xlu1 %v3242_v35, %s3131_s14  ;;  %v1332_v27 = vsel %vm3271_vm6, %v1327_v20, %v1331_v10  ;;  %v3103_v36 = vld.sshfl [vmem:[%s3204_s11 + $0x20] sm:$0xf pattern:$0x76325410]  ;;  %v1471_v39 = vrot.slane %v1463_v18, %v3206_v5  ;;  %v1581_v46 = vsel %vm1579_vm7, %v3043_v26, 0  ;;  %vm3515_vm7 = vmand %vm1660_vm1, %vm1830_vm5 }
  0x58   : > { %1436 = vrot.lane.b32.xlu0 %v1023_v43, %s3131_s14  ;;  %v1464_v37 = vcombine.low %v1318_v17, %v1332_v27  ;;  %v3104_v7 = vld.sshfl [vmem:[%s3204_s11 + $0x40] sm:$0xf pattern:$0x76325410]  ;;  %v1427_v40 = vor.u32 %v1426_v29, %v1423_v28  ;;  %v1432_v43 = vrot.slane %v1430_v32, 7  ;;  %2957 = vmatpush3.bf16.msra.mxu0 %v1581_v46  ;;  %v1189_v50 = vcombine.low %v3102_v34, %v3103_v36  ;;  %s3138_s14 = smov 64  }
  0x59   : > { %v3105_v30 = vld.sshfl [vmem:[%s3204_s11 + $0x48] sm:$0xf pattern:$0x76325410]  ;;  %v1515_v54 = vrot.slane %v1507_v51, %v3206_v5 }
  0x5a   : > { %v1478_v41 = vrot.slane %v1464_v37, %v3206_v5  ;;  %v1428_v44 = vrot.slane %v1427_v40, 2  ;;  %v1504_v53 = vcombine.low %v3104_v7, %v3105_v30  ;;  %v3106_v22 = vld.sshfl [vmem:[%s3204_s11] sm:$0xf pattern:$0x76325410] }
  0x5b   : > { %1098 = vrot.lane.b32.xlu1 %v1097_v2, %s3130_s13  ;;  %v3107_v33 = vld.sshfl [vmem:[%s3204_s11 + $0x8] sm:$0xf pattern:$0x76325410]  ;;  %s3142_s11 = smov 96  }
  0x5c   : > { %1438 = vrot.lane.b32.xlu0 %v1143_v12, %s3130_s13  ;;  %v1479_v45 = vcombine.low %v1471_v39, %v1478_v41  ;;  %v1433_v49 = vsel %vm3271_vm6, %v1428_v44, %v1432_v43  ;;  %v376_v59 = vcombine.low %v3106_v22, %v3107_v33 }
  0x5d   : > { %v1508_v52 = vcombine.low %v3297_v38, %v1433_v49 }
  0x5f   : > { %1121 = vrot.lane.b32.xlu1 %v1120_v15, %s3132_s15  ;;  %v1522_v42 = vrot.slane %v1508_v52, %v3206_v5 }
  0x60   : > { %1461 = vrot.lane.b32.xlu0 %v1460_v25, %s3132_s15 }
  0x61   : > { %v1523_v55 = vcombine.low %v1515_v54, %v1522_v42 }
  0x63   : > { %1144 = vrot.lane.b32.xlu1 %v1143_v12, %s3133_s16 }
  0x64   : > { %1480 = vrot.lane.b32.xlu0 %v1479_v45, %s3133_s16 }
  0x67   : > { %1167 = vrot.lane.b32.xlu1 %v1166_v47, %s3134_s17 }
  0x68   : > { %1482 = vrot.lane.b32.xlu0 %v1212_v48, %s3134_s17 }
  0x6b   : > { %1190 = vrot.lane.b32.xlu1 %v1189_v50, %s3135_s20 }
  0x6c   : > { %1505 = vrot.lane.b32.xlu0 %v1504_v53, %s3135_s20 }
  0x6f   : > { %1213 = vrot.lane.b32.xlu1 %v1212_v48, %s3136_s23 }
  0x73   : > { %1524 = vrot.lane.b32.xlu1 %v1523_v55, %s3136_s23 }
  0x87   : > { %v918_v56 = vpop.permute.xlu1 %917 }
  0x88   : > { %v1028_v20 = vsel %vm561_vm8, %v3221_v19, %v918_v56 }
  0x89   : > { %v399_v57 = vpop.permute.xlu0 %398 }
  0x8a   : > { %v564_v1 = vsel %vm561_vm8, %v376_v59, %v399_v57 }
  0x8b   : > { %v445_v38 = vpop.permute.xlu1 %444 }
  0x8d   : > { %v422_v0 = vpop.permute.xlu0 %421 }
  0x8e   : > { %v567_v3 = vsel %vm565_vm9, %v564_v1, %v422_v0  ;;  %v1699_v0 = vld [vmem:[#allocation2 + $0x30] sm:$0x7] }
  0x8f   : > { %v468_v58 = vpop.permute.xlu1 %467  ;;  %v570_v4 = vsel %vm568_vm10, %v567_v3, %v445_v38  ;;  %v1700_v3 = vsel %vm3449_vm3, 0, %v1699_v0 }
  0x90   : > { %v573_v9 = vsel %vm571_vm11, %v570_v4, %v468_v58  ;;  %v1693_v58 = vld [vmem:[#allocation2 + $0x28] sm:$0x7]  ;;  %v1702_v4 = vld [vmem:[#allocation2 + $0x34] sm:$0x7]  ;;  %1701 = vst [vmem:[#allocation2 + $0x30] sm:$0x7] %v1700_v3 }
  0x91   : > { %v939_v12 = vpop.permute.xlu0 %938  ;;  %v1694_v1 = vsel %vm3449_vm3, 0, %v1693_v58 }
  0x92   : > { %1695 = vst [vmem:[#allocation2 + $0x28] sm:$0x7] %v1694_v1 }
  0x93   : > { %v491_v60 = vpop.permute.xlu1 %490 }
  0x94   : > { %v576_v10 = vsel %vm574_vm12, %v573_v9, %v491_v60  ;;  %v1696_v60 = vld [vmem:[#allocation2 + $0x2c] sm:$0x7]  ;;  %v1708_v9 = vld [vmem:[#allocation2 + $0x3c] sm:$0x7] }
  0x95   : > { %v962_v16 = vpop.permute.xlu0 %961 }
  0x97   : > { %v514_v2 = vpop.permute.xlu1 %513 }
  0x98   : > { %v579_v13 = vsel %vm577_vm13, %v576_v10, %v514_v2  ;;  %v1697_v2 = vsel %vm3449_vm3, 0, %v1696_v60  ;;  %v1714_v10 = vld [vmem:[#allocation2 + $0x44] sm:$0x7] }
  0x99   : > { %v983_v17 = vpop.permute.xlu0 %982  ;;  %1698 = vst [vmem:[#allocation2 + $0x2c] sm:$0x7] %v1697_v2 }
  0x9b   : > { %v537_v8 = vpop.permute.xlu1 %536 }
  0x9c   : > { %v582_v14 = vsel %vm580_vm14, %v579_v13, %v537_v8  ;;  %v1703_v8 = vsel %vm3449_vm3, 0, %v1702_v4  ;;  %v1715_v13 = vsel %vm3449_vm3, 0, %v1714_v10  ;;  %v1720_v10 = vld [vmem:[#allocation2 + $0x4c] sm:$0x7] }
  0x9d   : > { %1704 = vst [vmem:[#allocation2 + $0x34] sm:$0x7] %v1703_v8  ;;  %1716 = vst [vmem:[#allocation2 + $0x44] sm:$0x7] %v1715_v13 }
  0x9f   : > { %v560_v63 = vpop.permute.xlu1 %559 }
  0xa0   : > { %v585_v6 = vsel %vm583_vm15, %v582_v14, %v560_v63  ;;  %v1711_v14 = vld [vmem:[#allocation2 + $0x40] sm:$0x7]  ;;  %v1717_v63 = vld [vmem:[#allocation2 + $0x48] sm:$0x7] }
  0xa1   : > { %2958 = vmatprep.mubr.msk.bf16.mxu0 %vm1570_vm0, %v585_v6  ;;  %v1712_v6 = vsel %vm3449_vm3, 0, %v1711_v14 }
  0xa2   : > { %1713 = vst [vmem:[#allocation2 + $0x40] sm:$0x7] %v1712_v6  ;;  %v3054_v6 = vld [vmem:[%s3684_s3] sm:$0xff]  }
  0xad   : > { %v937_v18 = vpop.permute.xlu0 %936 }
  0xae   : > { %v1030_v21 = vsel %vm565_vm9, %v1028_v20, %v937_v18  ;;  %v1669_v18 = vld [vmem:[#allocation2 + $0x8] sm:$0x7]  ;;  %v1672_v20 = vld [vmem:[#allocation2 + $0xc] sm:$0x7] }
  0xaf   : > { %v1032_v23 = vsel %vm568_vm10, %v1030_v21, %v939_v12  ;;  %v1709_v12 = vsel %vm3449_vm3, 0, %v1708_v9  ;;  %v1705_v9 = vld [vmem:[#allocation2 + $0x38] sm:$0x7] }
  0xb0   : > { %v1034_v24 = vsel %vm571_vm11, %v1032_v23, %v962_v16  ;;  %1710 = vst [vmem:[#allocation2 + $0x3c] sm:$0x7] %v1709_v12  ;;  %v1718_v16 = vsel %vm3449_vm3, 0, %v1717_v63  ;;  %v1670_v23 = vsel %vm3449_vm3, 0, %v1669_v18 }
  0xb1   : > { %1719 = vst [vmem:[#allocation2 + $0x48] sm:$0x7] %v1718_v16  ;;  %1671 = vst [vmem:[#allocation2 + $0x8] sm:$0x7] %v1670_v23  ;;  %v1721_v23 = vsel %vm3449_vm3, 0, %v1720_v10 }
  0xb2   : > { %1722 = vst [vmem:[#allocation2 + $0x4c] sm:$0x7] %v1721_v23 }
  0xba   : > { %v981_v61 = vpop.permute.xlu0 %980 }
  0xbb   : > { %v1036_v15 = vsel %vm574_vm12, %v1034_v24, %v981_v61  ;;  %v1673_v61 = vsel %vm3449_vm3, 0, %v1672_v20  ;;  %v1675_v24 = vld [vmem:[#allocation2 + $0x10] sm:$0x7]  ;;  %v1832_v20 = vld [vmem:[#allocation2 + $0x28] sm:$0x7] }
  0xbc   : > { %v1038_v25 = vsel %vm577_vm13, %v1036_v15, %v983_v17  ;;  %v1666_v17 = vld [vmem:[#allocation2 + $0x4] sm:$0x7]  ;;  %1674 = vst [vmem:[#allocation2 + $0xc] sm:$0x7] %v1673_v61  ;;  %v1681_v15 = vld [vmem:[#allocation2 + $0x18] sm:$0x7] }
  0xbd   : > { %v1667_v21 = vsel %vm3449_vm3, 0, %v1666_v17 }
  0xbe   : > { %v1006_v11 = vpop.permute.xlu0 %1005  ;;  %1668 = vst [vmem:[#allocation2 + $0x4] sm:$0x7] %v1667_v21  ;;  %v1706_v21 = vsel %vm3449_vm3, 0, %v1705_v9 }
  0xbf   : > { %v1040_v27 = vsel %vm580_vm14, %v1038_v25, %v1006_v11  ;;  %v1676_v11 = vsel %vm3449_vm3, 0, %v1675_v24  ;;  %v1687_v25 = vld [vmem:[#allocation2 + $0x20] sm:$0x7]  ;;  %1707 = vst [vmem:[#allocation2 + $0x38] sm:$0x7] %v1706_v21 }
  0xc0   : > { %1677 = vst [vmem:[#allocation2 + $0x10] sm:$0x7] %v1676_v11 }
  0xc2   : > { %v1074_v26 = vpop.permute.xlu0 %1073 }
  0xc3   : > { %v1217_v47 = vsel %vm561_vm8, %v3236_v31, %v1074_v26  ;;  %v1682_v26 = vsel %vm3449_vm3, 0, %v1681_v15  ;;  %v1838_v15 = vld [vmem:[#allocation2 + $0x30] sm:$0x7] }
  0xc4   : > { %1683 = vst [vmem:[#allocation2 + $0x18] sm:$0x7] %v1682_v26  ;;  %v1835_v26 = vld [vmem:[#allocation2 + $0x2c] sm:$0x7] }
  0xc5   : > { %v1025_v28 = vpop.permute.xlu1 %1024 }
  0xc6   : > { %v1042_v29 = vsel %vm583_vm15, %v1040_v27, %v1025_v28  ;;  %v1435_v32 = vpop.permute.xlu0 %1434  ;;  %v1688_v27 = vsel %vm3449_vm3, 0, %v1687_v25  ;;  %v1678_v28 = vld [vmem:[#allocation2 + $0x14] sm:$0x7] }
  0xc7   : > { %2959 = vmatmul.mubr.msk.bf16.vlgmr.msra.gmra.mrb[0].mxu0 %vm1570_vm0, %v1042_v29  ;;  %v1528_v34 = vsel %vm561_vm8, %v3242_v35, %v1435_v32  ;;  %v1684_v29 = vld [vmem:[#allocation2 + $0x1c] sm:$0x7]  ;;  %1689 = vst [vmem:[#allocation2 + $0x20] sm:$0x7] %v1688_v27  ;;  %v1690_v32 = vld [vmem:[#allocation2 + $0x24] sm:$0x7] }
  0xc8   : > { %v1841_v27 = vld [vmem:[#allocation2 + $0x34] sm:$0x7]  ;;  %vm2474_vm8 = vcmask 523264  }
  0xc9   : > { %v1076_v19 = vpop.permute.xlu1 %1075 }
  0xca   : > { %v1437_v36 = vpop.permute.xlu0 %1436  ;;  %v1219_v50 = vsel %vm565_vm9, %v1217_v47, %v1076_v19  ;;  %v1679_v19 = vsel %vm3449_vm3, 0, %v1678_v28  ;;  %v3137_v28 = vmov 0  }
  0xcb   : > { %v1530_v37 = vsel %vm565_vm9, %v1528_v34, %v1437_v36  ;;  %v1685_v34 = vsel %vm3449_vm3, 0, %v1684_v29  ;;  %v1691_v36 = vsel %vm3449_vm3, 0, %v1690_v32  ;;  %1680 = vst [vmem:[#allocation2 + $0x14] sm:$0x7] %v1679_v19  ;;  %2569 = vmatprep.subr.bf16.mxu1 %v3137_v28  ;;  %2999 = vset.pattern.permute.xlu1 %v3137_v28  ;;  %v3055_v19 = vld [vmem:[%s3684_s3 + $0x8] sm:$0xff]   ;;  %vm2477_vm9 = vcmask 654336  }
  0xcc   : > { %1686 = vst [vmem:[#allocation2 + $0x1c] sm:$0x7] %v1685_v34  ;;  %1692 = vst [vmem:[#allocation2 + $0x24] sm:$0x7] %v1691_v36  ;;  %2570 = vmatpush1.bf16.msra.mxu1 %v3054_v6  ;;  %3000 = vset.pattern.permute.xlu0 %v3137_v28 }
  0xcd   : > { %v1099_v39 = vpop.permute.xlu1 %1098  ;;  %2571 = vmatprep.subr.bf16.mxu1 %v3137_v28 }
  0xce   : > { %v1439_v7 = vpop.permute.xlu0 %1438  ;;  %v1221_v51 = vsel %vm568_vm10, %v1219_v50, %v1099_v39 }
  0xcf   : > { %v1532_v30 = vsel %vm568_vm10, %v1530_v37, %v1439_v7  ;;  %v1663_v37 = vld [vmem:[#allocation2] sm:$0x7]  ;;  %vm2480_vm10 = vcmask 785408  }
  0xd0   : > { %v1664_v39 = vsel %vm3449_vm3, 0, %v1663_v37  ;;  %v3492_v7 = vld [vmem:[%s3683_s2] ss:$0 sm:$0xff]  ;;  %2572 = vmatpush1.bf16.msra.mxu1 %v3055_v19 }
  0xd1   : > { %v1122_v40 = vpop.permute.xlu1 %1121  ;;  %1665 = vst [vmem:[#allocation2] sm:$0x7] %v1664_v39  ;;  %2573 = vmatprep.subr.bf16.mxu1 %v3137_v28 }
  0xd2   : > { %v1462_v41 = vpop.permute.xlu0 %1461  ;;  %v1223_v53 = vsel %vm571_vm11, %v1221_v51, %v1122_v40 }
  0xd3   : > { %v1534_v44 = vsel %vm571_vm11, %v1532_v30, %v1462_v41 }
  0xd5   : > { %v1145_v43 = vpop.permute.xlu1 %1144 }
  0xd6   : > { %v1481_v45 = vpop.permute.xlu0 %1480  ;;  %v1225_v42 = vsel %vm574_vm12, %v1223_v53, %v1145_v43 }
  0xd7   : > { %v1536_v46 = vsel %vm574_vm12, %v1534_v44, %v1481_v45  ;;  %vm2483_vm12 = vcmask 916480  }
  0xd9   : > { %v1168_v48 = vpop.permute.xlu1 %1167 }
  0xda   : > { %v1483_v35 = vpop.permute.xlu0 %1482  ;;  %v1227_v56 = vsel %vm577_vm13, %v1225_v42, %v1168_v48 }
  0xdb   : > { %v1538_v49 = vsel %vm577_vm13, %v1536_v46, %v1483_v35  ;;  %vm3144_vm13 = vmmov 0  }
  0xdd   : > { %v1191_v52 = vpop.permute.xlu1 %1190 }
  0xde   : > { %v1506_v54 = vpop.permute.xlu0 %1505  ;;  %v1229_v31 = vsel %vm580_vm14, %v1227_v56, %v1191_v52 }
  0xdf   : > { %v1540_v55 = vsel %vm580_vm14, %v1538_v49, %v1506_v54 }
  0xe1   : > { %v1214_v22 = vpop.permute.xlu1 %1213 }
  0xe2   : > { %v1231_v33 = vsel %vm583_vm15, %v1229_v31, %v1214_v22 }
  0xe3   : > { %2962 = vmatprep.mubr.msk.bf16.mxu0 %vm1570_vm0, %v1231_v33 }
  0xe5   : > { %v1525_v38 = vpop.permute.xlu1 %1524 }
  0xe6   : > { %v1542_v57 = vsel %vm583_vm15, %v1540_v55, %v1525_v38 }
  0xe7   : > { %2963 = vmatmul.mubr.msk.bf16.gmra.mrb[4].mxu0 %vm1570_vm0, %v1542_v57 }
 0x19a   : > { %v2960_v30 = vpop.f32.mrb[0].mxu0 }
 0x19b   : > { %v1626_v40 = vadd.f32 %v2960_v30, %v3492_v7  ;;  %v1617_v41 = vpop.f32.mrb[1].mxu0 }
 0x19c   : > { %v1618_v43 = vadd.f32 %v3492_v7, %v1617_v41  ;;  %v2961_v44 = vpop.f32.mrb[2].mxu0  ;;  %v3541_v41 = vld.sshfl [vmem:[#allocation2] sm:$0x13 pattern:$0x76325410] }
 0x19d   : > { %v1629_v45 = vadd.f32 %v2961_v44, %v3492_v7  ;;  %v1620_v46 = vpop.f32.mrb[3].mxu0  ;;  %v1650_v48 = vmax.f32 %v1626_v40, 0.0  ;;  %v3056_v40 = vld [vmem:[%s3684_s3 + $0x10] sm:$0xff]   ;;  %v2012_v44 = vshrl.u32 %v3541_v41, 16 }
 0x19e   : > { %v1621_v47 = vadd.f32 %v3492_v7, %v1620_v46  ;;  %v1648_v49 = vmax.f32 %v1618_v43, 0.0  ;;  %2574 = vmatpush1.bf16.msra.mxu1 %v3056_v40 }
 0x19f   : > { %v1651_v35 = vmax.f32 %v1629_v45, 0.0  ;;  %2575 = vmatprep.subr.bf16.mxu1 %v3137_v28 }
 0x1a0   : > { %v1649_v50 = vmax.f32 %v1621_v47, 0.0  ;;  %v2015_v47 = vshll.u32 %v3541_v41, 16 }
 0x1a1   : > { %v1657_v51 = vpack.c.bf16 %v1651_v35, %v1650_v48  ;;  %v2910_v52 = vpack.c.bf16 %v1651_v35, %v1651_v35 }
 0x1a2   : > { %v1656_v53 = vpack.c.bf16 %v1649_v50, %v1648_v49  ;;  %v2909_v54 = vpack.c.bf16 %v1649_v50, %v1649_v50 }
 0x1a3   : > { %v1759_v42 = vrot.slane %v1657_v51, %v3206_v5  ;;  %v1766_v55 = vrot.slane %v2910_v52, %v3206_v5 }
 0x1a4   : > { %v1731_v56 = vrot.slane %v1656_v53, %v3206_v5  ;;  %v1738_v31 = vrot.slane %v2909_v54, %v3206_v5  ;;  %v3547_v53 = vrot.slane %v2012_v44, 6 }
 0x1a5   : > { %v1767_v22 = vcombine.high %v1759_v42, %v1759_v42  ;;  %v1768_v33 = vcombine.high %v1766_v55, %v1766_v55  ;;  %v1775_v38 = vrot.slane %v1759_v42, %v3206_v5  ;;  %v1789_v57 = vrot.slane %v1766_v55, %v3206_v5 }
 0x1a6   : > { %v1739_v58 = vcombine.high %v1731_v56, %v1731_v56  ;;  %v1740_v60 = vcombine.high %v1738_v31, %v1738_v31  ;;  %1747 = vst.msk [vmem:[#allocation2 + $0x3c] sm:$0x3] %vm1746_vm4, %v1731_v56  ;;  %1749 = vst.msk [vmem:[#allocation2 + $0x44] sm:$0x3] %vm1746_vm4, %v1738_v31 }
 0x1a7   : > { %v1782_v0 = vrot.slane %v1767_v22, %v3206_v5  ;;  %v1796_v1 = vrot.slane %v1768_v33, %v3206_v5  ;;  %v1798_v2 = vshrl.u32 %v1775_v38, 16  ;;  %v1801_v3 = vshll.u32 %v1775_v38, 16 }
 0x1a8   : > { %v1812_v4 = vshrl.u32 %v1789_v57, 16  ;;  %v1815_v8 = vshll.u32 %v1789_v57, 16  ;;  %1748 = vst.msk [vmem:[#allocation2 + $0x40] sm:$0x3] %vm1746_vm4, %v1739_v58  ;;  %1750 = vst.msk [vmem:[#allocation2 + $0x48] sm:$0x3] %vm1746_vm4, %v1740_v60 }
 0x1a9   : > { %v1800_v12 = vrot.slane %v1798_v2, 7  ;;  %v1805_v13 = vshrl.u32 %v1782_v0, 16  ;;  %v1808_v14 = vshll.u32 %v1782_v0, 16  ;;  %v1819_v63 = vshrl.u32 %v1796_v1, 16 }
 0x1aa   : > { %v1814_v16 = vrot.slane %v1812_v4, 7  ;;  %v1822_v17 = vshll.u32 %v1796_v1, 16  ;;  %v3551_v57 = vrot.slane %v2015_v47, 7 }
 0x1ab   : > { %v1803_v61 = vor.u32 %v1801_v3, %v1800_v12  ;;  %v1807_v24 = vrot.slane %v1805_v13, 7  ;;  %v1821_v11 = vrot.slane %v1819_v63, 7  ;;  %v1986_v3 = vcombine.high %v3541_v41, %v3541_v41 }
 0x1ac   : > { %v1817_v25 = vor.u32 %v1815_v8, %v1814_v16 }
 0x1ad   : > { %v1810_v29 = vor.u32 %v1808_v14, %v1807_v24  ;;  %v1824_v32 = vor.u32 %v1822_v17, %v1821_v11  ;;  %v1833_v59 = vsel %vm3515_vm7, %v1803_v61, %v1832_v20  ;;  %v2021_v18 = vshll.u32 %v1986_v3, 16 }
 0x1ae   : > { %1834 = vst [vmem:[#allocation2 + $0x28] sm:$0x7] %v1833_v59  ;;  %v1839_v34 = vsel %vm3515_vm7, %v1817_v25, %v1838_v15 }
 0x1af   : > { %v1836_v36 = vsel %vm3515_vm7, %v1810_v29, %v1835_v26  ;;  %1840 = vst [vmem:[#allocation2 + $0x30] sm:$0x7] %v1839_v34  ;;  %v1842_v37 = vsel %vm3515_vm7, %v1824_v32, %v1841_v27  ;;  %v3108_v39 = vld.sshfl [vmem:[#allocation2 + $0x3c] sm:$0xf pattern:$0x76325410] }
 0x1b0   : > { %1837 = vst [vmem:[#allocation2 + $0x2c] sm:$0x7] %v1836_v36  ;;  %1843 = vst [vmem:[#allocation2 + $0x34] sm:$0x7] %v1842_v37 }
 0x1b1   : > { %v3109_v30 = vld.sshfl [vmem:[#allocation2 + $0x44] sm:$0xf pattern:$0x76325410] }
 0x1b2   : > { %v2381_v43 = vcombine.low %v3108_v39, %v3109_v30 }
 0x1b4   : > { %2382 = vrot.lane.b32.xlu1 %v2381_v43, %s3138_s14 }
 0x1b5   : > { %v2917_v45 = vld.sshfl [vmem:[#allocation2 + $0x28] sm:$0x13 pattern:$0x76325410] }
 0x1b6   : > { %v2090_v48 = vcombine.high %v2917_v45, %v2917_v45  ;;  %v2116_v35 = vshrl.u32 %v2917_v45, 16  ;;  %v2119_v49 = vshll.u32 %v2917_v45, 16  ;;  %v2919_v38 = vld.sshfl [vmem:[#allocation2 + $0x30] sm:$0x13 pattern:$0x76325410] }
 0x1b7   : > { %v2918_v46 = vld.sshfl [vmem:[#allocation2 + $0x2c] sm:$0x13 pattern:$0x76325410]  ;;  %v2106_v14 = vcombine.high %v2919_v38, %v2919_v38  ;;  %v2144_v63 = vshrl.u32 %v2919_v38, 16  ;;  %v2147_v20 = vshll.u32 %v2919_v38, 16 }
 0x1b8   : > { %v2098_v51 = vcombine.high %v2918_v46, %v2918_v46  ;;  %v2130_v52 = vshrl.u32 %v2918_v46, 16  ;;  %v2118_v55 = vrot.slane %v2116_v35, 6  ;;  %v2121_v56 = vrot.slane %v2119_v49, 7  ;;  %v1956_v38 = vld [vmem:[#allocation2 + $0xc] sm:$0x7] }
 0x1b9   : > { %v2133_v31 = vshll.u32 %v2918_v46, 16  ;;  %v3554_v0 = vld.sshfl [vmem:[#allocation2 + $0x34] sm:$0x13 pattern:$0x76325410]  ;;  %v3556_v2 = vshll.u32 %v2090_v48, 16 }
 0x1ba   : > { %v2964_v50 = vpop.f32.mrb[4].mxu0  ;;  %v2122_v1 = vor.u32 %v2121_v56, %v2118_v55  ;;  %v2132_v8 = vrot.slane %v2130_v52, 6  ;;  %v3561_v10 = vshll.u32 %v2098_v51, 16  ;;  %v2114_v17 = vcombine.high %v3554_v0, %v3554_v0  ;;  %v1950_v52 = vld [vmem:[#allocation2 + $0x4] sm:$0x7]  ;;  %v3059_v55 = vld [vmem:[%s3684_s3 + $0x18] sm:$0xff]  }
 0x1bb   : > { %v1642_v54 = vadd.f32 %v2964_v50, %v3492_v7  ;;  %v1633_v42 = vpop.f32.mrb[5].mxu0  ;;  %v2135_v9 = vrot.slane %v2133_v31, 7  ;;  %v2146_v29 = vrot.slane %v2144_v63, 6  ;;  %v2158_v32 = vshrl.u32 %v3554_v0, 16  ;;  %2576 = vmatpush1.bf16.msra.mxu1 %v3059_v55 }
 0x1bc   : > { %v1634_v22 = vadd.f32 %v3492_v7, %v1633_v42  ;;  %v2965_v33 = vpop.f32.mrb[6].mxu0  ;;  %v3565_v61 = vrot.slane %v2122_v1, 2  ;;  %v2141_v25 = vrot.slane %v3561_v10, 7  ;;  %v2149_v34 = vrot.slane %v2147_v20, 7  ;;  %2577 = vmatprep.subr.bf16.mxu1 %v3137_v28 }
 0x1bd   : > { %v1645_v58 = vadd.f32 %v2965_v33, %v3492_v7  ;;  %v1636_v60 = vpop.f32.mrb[7].mxu0  ;;  %v1654_v12 = vmax.f32 %v1642_v54, 0.0  ;;  %v2136_v15 = vor.u32 %v2135_v9, %v2132_v8  ;;  %v2161_v36 = vshll.u32 %v3554_v0, 16  ;;  %v1953_v0 = vld [vmem:[#allocation2 + $0x8] sm:$0x7] }
 0x1be   : > { %v1637_v4 = vadd.f32 %v3492_v7, %v1636_v60  ;;  %v1652_v6 = vmax.f32 %v1634_v22, 0.0  ;;  %v2127_v7 = vrot.slane %v3556_v2, 7  ;;  %v2153_v45 = vshll.u32 %v2106_v14, 16  ;;  %v3060_v14 = vld [vmem:[%s3684_s3 + $0x20] sm:$0xff]   ;;  %v3061_v2 = vld [vmem:[%s3684_s3 + $0x28] sm:$0xff]  }
 0x1bf   : > { %v1655_v13 = vmax.f32 %v1645_v58, 0.0  ;;  %v2160_v46 = vrot.slane %v2158_v32, 6  ;;  %v2137_v49 = vrot.slane %v2136_v15, 2  ;;  %v2150_v54 = vor.u32 %v2149_v34, %v2146_v29  ;;  %2578 = vmatpush1.bf16.msra.mxu1 %v3060_v14 }
 0x1c0   : > { %v1653_v16 = vmax.f32 %v1637_v4, 0.0  ;;  %v2163_v42 = vrot.slane %v2161_v36, 7  ;;  %v2167_v4 = vshll.u32 %v2114_v17, 16  ;;  %v2155_v29 = vrot.slane %v2153_v45, 7  ;;  %2579 = vmatprep.subr.bf16.mxu1 %v3137_v28  ;;  %v3063_v45 = vld [vmem:[%s3684_s3 + $0x38] sm:$0xff]  }
 0x1c1   : > { %v1659_v21 = vpack.c.bf16 %v1655_v13, %v1654_v12  ;;  %v2912_v23 = vpack.c.bf16 %v1655_v13, %v1655_v13  ;;  %v1959_v13 = vld [vmem:[#allocation2 + $0x10] sm:$0x7]  ;;  %v2151_v20 = vrot.slane %v2150_v54, 2 }
 0x1c2   : > { %v1658_v24 = vpack.c.bf16 %v1653_v16, %v1652_v6  ;;  %v2911_v11 = vpack.c.bf16 %v1653_v16, %v1653_v16  ;;  %v2164_v1 = vor.u32 %v2163_v42, %v2160_v46  ;;  %v3112_v6 = vld.sshfl [vmem:[#allocation2 + $0x28] sm:$0xf pattern:$0x76325410] }
 0x1c3   : > { %v1879_v26 = vrot.slane %v1659_v21, %v3206_v5  ;;  %v1886_v27 = vrot.slane %v2912_v23, %v3206_v5  ;;  %v3113_v16 = vld.sshfl [vmem:[#allocation2 + $0x30] sm:$0xf pattern:$0x76325410]  ;;  %v2169_v23 = vrot.slane %v2167_v4, 7  ;;  %v2156_v36 = vsel %vm3271_vm6, %v2151_v20, %v2155_v29  ;;  %2580 = vmatpush1.bf16.msra.mxu1 %v3061_v2 }
 0x1c4   : > { %v1852_v59 = vrot.slane %v1658_v24, %v3206_v5  ;;  %v1859_v19 = vrot.slane %v2911_v11, %v3206_v5  ;;  %v2165_v21 = vrot.slane %v2164_v1, 2  ;;  %2581 = vmatprep.subr.bf16.mxu1 %v3137_v28  ;;  %v2358_v46 = vcombine.low %v3112_v6, %v3113_v16  ;;  %v3064_v16 = vld [vmem:[%s3684_s3 + $0x40] sm:$0xff]  }
 0x1c5   : > { %v1887_v37 = vcombine.high %v1879_v26, %v1879_v26  ;;  %v1888_v39 = vcombine.high %v1886_v27, %v1886_v27  ;;  %v1895_v30 = vrot.slane %v1879_v26, %v3206_v5  ;;  %v1909_v40 = vrot.slane %v1886_v27, %v3206_v5 }
 0x1c6   : > { %v1860_v43 = vcombine.high %v1852_v59, %v1852_v59  ;;  %v1861_v44 = vcombine.high %v1859_v19, %v1859_v19  ;;  %1867 = vst.msk [vmem:[#allocation2 + $0x18] sm:$0x3] %vm1746_vm4, %v1852_v59  ;;  %1869 = vst.msk [vmem:[#allocation2 + $0x20] sm:$0x3] %vm1746_vm4, %v1859_v19  ;;  %v2142_v27 = vsel %vm3271_vm6, %v2137_v49, %v2141_v25 }
 0x1c7   : > { %v1902_v47 = vrot.slane %v1887_v37, %v3206_v5  ;;  %v1916_v48 = vrot.slane %v1888_v39, %v3206_v5  ;;  %v1918_v35 = vshrl.u32 %v1895_v30, 16  ;;  %v1921_v50 = vshll.u32 %v1895_v30, 16 }
 0x1c8   : > { %v1932_v51 = vshrl.u32 %v1909_v40, 16  ;;  %1868 = vst.msk [vmem:[#allocation2 + $0x1c] sm:$0x3] %vm1746_vm4, %v1860_v43  ;;  %1870 = vst.msk [vmem:[#allocation2 + $0x24] sm:$0x3] %vm1746_vm4, %v1861_v44  ;;  %v1935_v22 = vshll.u32 %v1909_v40, 16  ;;  %v2170_v32 = vsel %vm3271_vm6, %v2165_v21, %v2169_v23  ;;  %v2128_v25 = vsel %vm3271_vm6, %v3565_v61, %v2127_v7 }
 0x1c9   : > { %v1920_v56 = vrot.slane %v1918_v35, 7  ;;  %v1925_v31 = vshrl.u32 %v1902_v47, 16  ;;  %v1939_v33 = vshrl.u32 %v1916_v48, 16  ;;  %v1928_v58 = vshll.u32 %v1902_v47, 16  ;;  %v3062_v61 = vld [vmem:[%s3684_s3 + $0x30] sm:$0xff]  }
 0x1ca   : > { %v1934_v60 = vrot.slane %v1932_v51, 7  ;;  %v1942_v12 = vshll.u32 %v1916_v48, 16  ;;  %v2018_v37 = vor.u32 %v3551_v57, %v3547_v53  ;;  %v2384_v39 = vcombine.low %v2128_v25, %v2142_v27  ;;  %2582 = vmatpush1.bf16.msra.mxu1 %v3062_v61 }
 0x1cb   : > { %v1923_v8 = vor.u32 %v1921_v50, %v1920_v56  ;;  %v1927_v9 = vrot.slane %v1925_v31, 7  ;;  %v1941_v10 = vrot.slane %v1939_v33, 7  ;;  %v2385_v30 = vcombine.low %v2156_v36, %v2170_v32  ;;  %2583 = vmatprep.subr.bf16.mxu1 %v3137_v28 }
 0x1cc   : > { %v1937_v63 = vor.u32 %v1935_v22, %v1934_v60  ;;  %v2019_v53 = vrot.slane %v2018_v37, 2  ;;  %v2023_v57 = vrot.slane %v2021_v18, 7  ;;  %v2392_v41 = vrot.slane %v2384_v39, %v3206_v5 }
 0x1cd   : > { %v1930_v24 = vor.u32 %v1928_v58, %v1927_v9  ;;  %v1944_v17 = vor.u32 %v1942_v12, %v1941_v10  ;;  %v1951_v11 = vsel %vm3515_vm7, %v1923_v8, %v1950_v52  ;;  %v3110_v15 = vld.sshfl [vmem:[#allocation2 + $0x14] sm:$0xf pattern:$0x76325410]  ;;  %v2399_v3 = vrot.slane %v2385_v30, %v3206_v5 }
 0x1ce   : > { %1952 = vst [vmem:[#allocation2 + $0x4] sm:$0x7] %v1951_v11  ;;  %v1957_v26 = vsel %vm3515_vm7, %v1937_v63, %v1956_v38  ;;  %2584 = vmatpush1.bf16.msra.mxu1 %v3063_v45 }
 0x1cf   : > { %v1954_v59 = vsel %vm3515_vm7, %v1930_v24, %v1953_v0  ;;  %1958 = vst [vmem:[#allocation2 + $0xc] sm:$0x7] %v1957_v26  ;;  %v1960_v19 = vsel %vm3515_vm7, %v1944_v17, %v1959_v13  ;;  %v3111_v34 = vld.sshfl [vmem:[#allocation2 + $0x1c] sm:$0xf pattern:$0x76325410]  ;;  %v2400_v22 = vcombine.low %v2392_v41, %v2399_v3  ;;  %2585 = vmatprep.subr.bf16.mxu1 %v3137_v28 }
 0x1d0   : > { %1955 = vst [vmem:[#allocation2 + $0x8] sm:$0x7] %v1954_v59  ;;  %1961 = vst [vmem:[#allocation2 + $0x10] sm:$0x7] %v1960_v19  ;;  %v2316_v40 = vcombine.low %v3110_v15, %v3111_v34  ;;  %v2024_v24 = vsel %vm3271_vm6, %v2019_v53, %v2023_v57 }
 0x1d1   : > { %v3618_v43 = vld.sshfl [vmem:[#allocation2 + $0x18] sm:$0xf pattern:$0x76325410] }
 0x1d2   : > { %v3115_v7 = vld.sshfl [vmem:[#allocation2 + $0x20] sm:$0xf pattern:$0x76325410]  ;;  %2317 = vrot.lane.b32.xlu0 %v2316_v40, %s3132_s15  ;;  %s3139_s15 = smov 48   ;;  %2586 = vmatpush1.bf16.msra.mxu1 %v3064_v16 }
 0x1d3   : > { %v2446_v17 = vcombine.low %v3618_v43, %v3115_v7  ;;  %v2613_v16 = vld [vmem:[%s3686_s5] sm:$0x7] }
 0x1d5   : > { %v2921_v44 = vld.sshfl [vmem:[#allocation2 + $0x4] sm:$0x13 pattern:$0x76325410] }
 0x1d6   : > { %v2923_v47 = vld.sshfl [vmem:[#allocation2 + $0xc] sm:$0x13 pattern:$0x76325410]  ;;  %v2194_v48 = vcombine.high %v2921_v44, %v2921_v44  ;;  %v2220_v35 = vshrl.u32 %v2921_v44, 16  ;;  %v2223_v49 = vshll.u32 %v2921_v44, 16  ;;  %2359 = vrot.lane.b32.xlu0 %v2358_v46, %s3139_s15 }
 0x1d7   : > { %v2922_v50 = vld.sshfl [vmem:[#allocation2 + $0x8] sm:$0x13 pattern:$0x76325410]  ;;  %v2210_v51 = vcombine.high %v2923_v47, %v2923_v47  ;;  %v2248_v52 = vshrl.u32 %v2923_v47, 16  ;;  %v2251_v54 = vshll.u32 %v2923_v47, 16 }
 0x1d8   : > { %v2924_v42 = vld.sshfl [vmem:[#allocation2 + $0x10] sm:$0x13 pattern:$0x76325410]  ;;  %v2202_v55 = vcombine.high %v2922_v50, %v2922_v50  ;;  %v2222_v56 = vrot.slane %v2220_v35, 6  ;;  %v2225_v31 = vrot.slane %v2223_v49, 7 }
 0x1d9   : > { %v2229_v33 = vshll.u32 %v2194_v48, 16  ;;  %v2234_v38 = vshrl.u32 %v2922_v50, 16  ;;  %v2237_v58 = vshll.u32 %v2922_v50, 16  ;;  %v2250_v1 = vrot.slane %v2248_v52, 6 }
 0x1da   : > { %v2226_v60 = vor.u32 %v2225_v31, %v2222_v56  ;;  %v2243_v0 = vshll.u32 %v2202_v55, 16  ;;  %v2253_v4 = vrot.slane %v2251_v54, 7  ;;  %v2218_v8 = vcombine.high %v2924_v42, %v2924_v42  ;;  %2401 = vrot.lane.b32.xlu0 %v2400_v22, %s3140_s9  ;;  %v3116_v37 = vld.sshfl [vmem:[#allocation2 + $0x4] sm:$0xf pattern:$0x76325410] }
 0x1db   : > { %v2236_v9 = vrot.slane %v2234_v38, 6  ;;  %v2239_v10 = vrot.slane %v2237_v58, 7  ;;  %v2257_v12 = vshll.u32 %v2210_v51, 16  ;;  %v2231_v14 = vrot.slane %v2229_v33, 7  ;;  %v2614_v58 = vld [vmem:[%s3687_s6] sm:$0x1f] }
 0x1dc   : > { %v2227_v13 = vrot.slane %v2226_v60, 2  ;;  %v2254_v63 = vor.u32 %v2253_v4, %v2250_v1  ;;  %v2262_v6 = vshrl.u32 %v2924_v42, 16  ;;  %v2245_v21 = vrot.slane %v2243_v0, 7  ;;  %v2925_v60 = vld [vmem:[%s3685_s4] ss:$0 sm:$0xff] }
 0x1dd   : > { %v2240_v20 = vor.u32 %v2239_v10, %v2236_v9  ;;  %v2265_v23 = vshll.u32 %v2924_v42, 16  ;;  %v2259_v29 = vrot.slane %v2257_v12, 7  ;;  %v2271_v59 = vshll.u32 %v2218_v8, 16 }
 0x1de   : > { %v2232_v11 = vsel %vm3271_vm6, %v2227_v13, %v2231_v14  ;;  %v2255_v15 = vrot.slane %v2254_v63, 2  ;;  %v2264_v26 = vrot.slane %v2262_v6, 6  ;;  %2447 = vrot.lane.b32.xlu0 %v2446_v17, %s3141_s10  ;;  %v3117_v30 = vld.sshfl [vmem:[#allocation2 + $0xc] sm:$0xf pattern:$0x76325410] }
 0x1df   : > { %v2241_v27 = vrot.slane %v2240_v20, 2  ;;  %v2267_v32 = vrot.slane %v2265_v23, 7  ;;  %v2319_v19 = vcombine.low %v2024_v24, %v2232_v11  ;;  %v2273_v40 = vrot.slane %v2271_v59, 7  ;;  %v3067_v63 = vld [vmem:[%s3688_s7 + $0x4] ss:$8 sps:$4 sm:$0xff]  }
 0x1e0   : > { %v2260_v25 = vsel %vm3271_vm6, %v2255_v15, %v2259_v29  ;;  %v2423_v45 = vcombine.low %v3116_v37, %v3117_v30  ;;  %v3118_v47 = vld.sshfl [vmem:[#allocation2 + $0x8] sm:$0xf pattern:$0x76325410]  ;;  %v3143_v38 = vmov 0.0  }
 0x1e1   : > { %v2246_v34 = vsel %vm3271_vm6, %v2241_v27, %v2245_v21  ;;  %v2268_v36 = vor.u32 %v2267_v32, %v2264_v26  ;;  %v2327_v43 = vrot.slane %v2319_v19, %v3206_v5  ;;  %v3119_v48 = vld.sshfl [vmem:[#allocation2] sm:$0xf pattern:$0x76325410]  ;;  %2966 = vmatprep.subr.bf16.mxu0 %v3143_v38  ;;  %2968 = vmatprep.mubr.msk.bf16.mxu0 %vm3144_vm13, %v3143_v38 }
 0x1e2   : > { %v2449_v18 = vcombine.low %v2232_v11, %v2246_v34  ;;  %v2320_v39 = vcombine.low %v2246_v34, %v2260_v25  ;;  %v2295_v49 = vcombine.low %v3119_v48, %v3118_v47  ;;  %v3065_v20 = vld [vmem:[%s3688_s7] ss:$8 sps:$4 sm:$0xff]  }
 0x1e3   : > { %v2269_v2 = vrot.slane %v2268_v36, 2 }
 0x1e4   : > { %v2334_v61 = vrot.slane %v2320_v39, %v3206_v5  ;;  %v2457_v57 = vrot.slane %v2449_v18, %v3206_v5 }
 0x1e5   : > { %v2274_v7 = vsel %vm3271_vm6, %v2269_v2, %v2273_v40  ;;  %vm2471_vm6 = vcmask 392192  }
 0x1e6   : > { %v2450_v53 = vcombine.low %v2260_v25, %v2274_v7  ;;  %v2335_v41 = vcombine.low %v2327_v43, %v2334_v61 }
 0x1e8   : > { %v2464_v3 = vrot.slane %v2450_v53, %v3206_v5  ;;  %2336 = vrot.lane.b32.xlu1 %v2335_v41, %s3136_s23 }
 0x1ea   : > { %v2465_v44 = vcombine.low %v2457_v57, %v2464_v3 }
 0x1ec   : > { %2935 = vmatprep.mubr.msk.bf16.mxu1 %vm571_vm11, %v2465_v44  ;;  %2424 = vrot.lane.b32.xlu1 %v2423_v45, %s3142_s11 }
 0x1f0   : > { %2617 = vperm.xlu1 %2999, %v2614_v58  }
 0x226   : > { %v2383_v62 = vpop.permute.xlu1 %2382 }
 0x244   : > { %v2318_v46 = vpop.permute.xlu0 %2317 }
 0x245   : > { %v2468_v51 = vsel %vm571_vm11, %v2295_v49, %v2318_v46 }
 0x248   : > { %v2360_v35 = vpop.permute.xlu0 %2359 }
 0x24c   : > { %v2402_v50 = vpop.permute.xlu0 %2401 }
 0x250   : > { %v2448_v31 = vpop.permute.xlu0 %2447 }
 0x25a   : > { %v2337_v52 = vpop.permute.xlu1 %2336 }
 0x25b   : > { %v2470_v5 = vsel %vm583_vm15, %v2468_v51, %v2337_v52 }
 0x25c   : > { %v2473_v54 = vsel %vm2471_vm6, %v2470_v5, %v2360_v35 }
 0x25d   : > { %v2476_v42 = vsel %vm2474_vm8, %v2473_v54, %v2383_v62 }
 0x25e   : > { %v2479_v55 = vsel %vm2477_vm9, %v2476_v42, %v2402_v50  ;;  %v2425_v56 = vpop.permute.xlu1 %2424 }
 0x25f   : > { %v2482_v22 = vsel %vm2480_vm10, %v2479_v55, %v2425_v56 }
 0x260   : > { %v2485_v33 = vsel %vm2483_vm12, %v2482_v22, %v2448_v31 }
 0x261   : > { %2602 = vmatmul.mubr.bf16.vlgmr.msra.gmra.mrb[0].mxu1 %v2485_v33 }
 0x26f   : > { %v2618_v21 = vpop.permute.xlu1 %2617 }
 0x334   : > { %v2603_v0 = vpop.f32.mrb[0].mxu1 }
 0x335   : > { %v2604_v1 = vadd.f32 %v2925_v60, %v2603_v0  ;;  %v2605_v4 = vpop.f32.mrb[1].mxu1 }
 0x336   : > { %v2606_v8 = vpop.f32.mrb[2].mxu1 }
 0x337   : > { %v2607_v9 = vadd.f32 %v2925_v60, %v2606_v8  ;;  %v2608_v10 = vpop.f32.mrb[3].mxu1  ;;  %v2610_v12 = vmax.f32 %v2604_v1, 0.0 }
 0x339   : > { %v2611_v13 = vmax.f32 %v2607_v9, 0.0 }
 0x33b   : > { %v2612_v14 = vpack.c.bf16 %v2611_v13, %v2610_v12 }
 0x33d   : > { %v2624_v6 = vsel %vm583_vm15, %v2612_v14, 0 }
 0x33e   : > { %2967 = vmatpush3.bf16.xpose.msra.mxu0 %v2624_v6 }
 0x33f   : > { %2682 = vmatprep.subr.bf16.mxu0 %v3067_v63 }
 0x345   : > { %2969 = vmatmul.mubr.msk.bf16.vlgmr.msra.gmra.mrb[8].mxu0 %vm583_vm15, %v2613_v16 }
 0x346   : > { %2683 = vmatpush1.bf16.msra.mxu0 %v3065_v20  ;;  %2714 = vmatprep.mubr.bf16.mxu0 %v3137_v28 }
 0x418   : > { %v2660_v23 = vpop.f32.mrb[8].mxu0 }
 0x419   : > { %v2661_v24 = vadd.f32 %v2660_v23, %v2618_v21  ;;  %v2970_v17 = vpop.f32.mrb[9].mxu0 }
 0x41a   : > { %v2663_v11 = vpop.f32.mrb[10].mxu0 }
 0x41b   : > { %v2666_v15 = vpack.c.bf16 %v2661_v24, %v2661_v24  ;;  %v2971_v26 = vpop.f32.mrb[11].mxu0 }
 0x41d   : > { %2939 = vmatmul.mubr.msk.bf16.vlgmr.msra.gmra.mrb[12].mxu0 %vm571_vm11, %v2666_v15 }
 0x4f0   : > { %v2716_v27 = vpop.f32.mrb[12].mxu0 }
 0x4f1   : > { %2723 = vst [vmem:[%s310_s26] sm:$0x1f] %v2716_v27  ;;  %v2718_v29 = vpop.f32.mrb[13].mxu0 }
 0x4f2   : > { %2724 = vst [vmem:[%s310_s26 + $0x8] sm:$0x1f] %v2718_v29  ;;  %v2720_v28 = vpop.f32.mrb[14].mxu0 }
 0x4f3   : > { %v2721_v32 = vpop.f32.mrb[15].mxu0 }
 0x4f4 PF: > { %s18_s27 = sadd.s32 1, %s3126_s27  }
 0x4f5   : > { %p15_p5 = scmp.ge.s32.totalorder %s18_s27, 4  }
 0x4f7   :  { %17 = sbr.rel (!%p15_p5) target bundleno = 1 (0x1), region = 106 }

</bundles_post_ra>
